<compile_context>
chip_gen: v7x
topology: tpu7x:2x2x1
jax: 0.10.0
libtpu: 0.0.40
codegen_flags: <defaults>
</compile_context>

<pallas_src>
import math
from functools import partial

import jax
import jax.numpy as jnp
from jax.experimental import pallas as pl
from jax.experimental.pallas import tpu as pltpu

# ----- small config consistent with the module's forward (scaled down) -----
IMG = 16
PATCH = 8
IN_CHANS = 3
EMBED_DIM = 32
DEPTH = 2
NUM_HEADS = 4
MLP_RATIO = 4.0
BATCH = 2
NUM_CLASSES = 0                      # -> self.fc = nn.Identity()

NUM_PATCHES = (IMG // PATCH) ** 2    # 4
N_TOKENS = NUM_PATCHES + 1           # 5 (cls + patches)
HEAD_DIM = EMBED_DIM // NUM_HEADS    # 8
MLP_HIDDEN = int(EMBED_DIM * MLP_RATIO)   # 128
LN_EPS = 1e-5                        # nn.LayerNorm default


# ------------------------------- kernel -----------------------------------
def _layernorm(z, w, b):
    mu = jnp.mean(z, axis=-1, keepdims=True)
    var = jnp.mean(jnp.square(z - mu), axis=-1, keepdims=True)
    return (z - mu) * jax.lax.rsqrt(var + LN_EPS) * w + b


def vit_fused_kernel(aug_ref, add_ref, patch_w_ref,
                     ln1_w_ref, ln1_b_ref, wq_ref, wk_ref, wv_ref, wproj_ref, bproj_ref,
                     ln2_w_ref, ln2_b_ref, w1_ref, b1_ref, w2_ref, b2_ref,
                     norm_w_ref, norm_b_ref, o_ref, *, num_heads, depth):
    """forward_features for ONE image (grid step = one batch element)."""
    n = aug_ref.shape[0]             # N_TOKENS
    d = patch_w_ref.shape[-1]        # EMBED_DIM

    # ---- patch embed + cls token + pos embed (cls/pos/conv-bias folded into `add`) ----
    x = (jnp.dot(aug_ref[...], patch_w_ref[...], preferred_element_type=jnp.float32)
         + add_ref[...])                                               # (N, D)

    for l in range(depth):            # static unroll; weights resident in VMEM across blocks
        # ---- Attention(norm1(x)) ----  (attention scale already folded into wq)
        xn = _layernorm(x, ln1_w_ref[l], ln1_b_ref[l])
        xh = jnp.broadcast_to(xn[None], (num_heads, n, d))             # (H, N, D)
        q = jnp.einsum('hnd,hde->hne', xh, wq_ref[l], preferred_element_type=jnp.float32)
        k = jnp.einsum('hnd,hde->hne', xh, wk_ref[l], preferred_element_type=jnp.float32)
        v = jnp.einsum('hnd,hde->hne', xh, wv_ref[l], preferred_element_type=jnp.float32)

        s = jnp.einsum('hqe,hke->hqk', q, k, preferred_element_type=jnp.float32)  # (H, N, N)
        s = s - jnp.max(s, axis=-1, keepdims=True)
        e = jnp.exp(s)
        p = e * pl.reciprocal(jnp.sum(e, axis=-1, keepdims=True), approx=True)
        ctx = jnp.einsum('hqk,hke->hqe', p, v, preferred_element_type=jnp.float32)  # (H, N, hd)

        # head merge folded into the projection: y = sum_h ctx_h @ Wproj_h
        y = jnp.sum(jnp.einsum('hne,hed->hnd', ctx, wproj_ref[l],
                               preferred_element_type=jnp.float32), axis=0) + bproj_ref[l]
        x = x + y                     # drop_path / dropout identity (rate 0 / eval)

        # ---- MLP(norm2(x)) ----
        xn2 = _layernorm(x, ln2_w_ref[l], ln2_b_ref[l])
        h1 = jnp.dot(xn2, w1_ref[l], preferred_element_type=jnp.float32) + b1_ref[l]
        h1 = 0.5 * h1 * (1.0 + jax.lax.erf(h1 * (1.0 / math.sqrt(2.0))))   # exact GELU (nn.GELU)
        y2 = jnp.dot(h1, w2_ref[l], preferred_element_type=jnp.float32) + b2_ref[l]
        x = x + y2

    # ---- final LayerNorm on the cls token, single store (LN commutes with row select) ----
    o_ref[...] = _layernorm(x[0:1, :], norm_w_ref[...], norm_b_ref[...]).astype(o_ref.dtype)


# ------------------------------- wrapper -----------------------------------
@jax.jit
def vit_forward(x, params):
    """VisionTransformer_multi_fc.forward for a single (non-list) input.
    The idx_crops path reduces to forward_features(x) followed by fc (= Identity)."""
    B, C, H, W = x.shape
    p = PATCH
    gh, gw = H // p, W // p
    n = gh * gw + 1                      # == N_TOKENS -> interpolate_pos_encoding is identity
    cpp = C * p * p
    d = EMBED_DIM
    hd = d // NUM_HEADS
    mh = MLP_HIDDEN

    # --- cheap XLA-side glue: patch gather, cls-slot padding, folded additive term ---
    patches = (x.reshape(B, C, gh, p, gw, p)
                .transpose(0, 2, 4, 1, 3, 5)
                .reshape(B, gh * gw, cpp))
    aug = jnp.concatenate([jnp.zeros((B, 1, cpp), x.dtype), patches], axis=1)   # (B, N, cpp)

    cls_row = params["cls_token"].reshape(1, d) + params["pos_embed"][0, 0:1]
    patch_rows = params["pos_embed"][0, 1:] + params["patch_b"]
    add = jnp.concatenate([cls_row, patch_rows], axis=0)                        # (N, D) shared over batch

    # --- head-major weight layouts (layout plumbing only; scale folded into q columns) ---
    scale = hd ** (-0.5)                                                        # qk_scale=None default
    wqkv_h = (params["wqkv"].reshape(DEPTH, d, 3, NUM_HEADS, hd)
              .transpose(0, 2, 3, 1, 4))                                        # (DEPTH, 3, H, D, hd)
    wq = wqkv_h[:, 0] * jnp.float32(scale)
    wk = wqkv_h[:, 1]
    wv = wqkv_h[:, 2]
    wproj_h = params["wproj"].reshape(DEPTH, NUM_HEADS, hd, d)                  # (DEPTH, H, hd, D)

    def full(shape):                      # whole-array block, constant index (resident weights)
        return pl.BlockSpec(shape, lambda b, _s=len(shape): (0,) * _s)

    # rough cost hints for the XLA scheduler around the fused call
    flops_layer = (2 * n * d * 3 * d + 4 * NUM_HEADS * n * n * hd + 2 * n * d * d + 4 * n * d * mh)
    flops = B * (2 * n * cpp * d + DEPTH * flops_layer)
    transcendentals = B * DEPTH * (NUM_HEADS * n * n + n * mh)
    param_elems = (cpp * d + n * d + 2 * d
                   + DEPTH * (2 * d + 3 * d * d + d * d + d + 2 * d + d * mh + mh + mh * d + d))
    bytes_accessed = 4 * (B * n * cpp + param_elems + B * d)

    out = pl.pallas_call(
        partial(vit_fused_kernel, num_heads=NUM_HEADS, depth=DEPTH),
        out_shape=jax.ShapeDtypeStruct((B, 1, d), x.dtype),
        grid=(B,),
        in_specs=[
            pl.BlockSpec((None, n, cpp), lambda b: (b, 0, 0)),   # aug: per-batch block
            full((n, d)),                                        # add (cls+pos+conv-bias)
            full((cpp, d)),                                      # patch embed weight
            full((DEPTH, 1, d)), full((DEPTH, 1, d)),            # ln1 w, b
            full((DEPTH, NUM_HEADS, d, hd)),                     # wq (scale folded in)
            full((DEPTH, NUM_HEADS, d, hd)),                     # wk
            full((DEPTH, NUM_HEADS, d, hd)),                     # wv
            full((DEPTH, NUM_HEADS, hd, d)),                     # wproj (head-major rows)
            full((DEPTH, 1, d)),                                 # bproj
            full((DEPTH, 1, d)), full((DEPTH, 1, d)),            # ln2 w, b
            full((DEPTH, d, mh)), full((DEPTH, 1, mh)),          # mlp fc1 w, b
            full((DEPTH, mh, d)), full((DEPTH, 1, d)),           # mlp fc2 w, b
            full((1, d)), full((1, d)),                          # final norm w, b
        ],
        out_specs=pl.BlockSpec((None, 1, d), lambda b: (b, 0, 0)),
        compiler_params=pltpu.CompilerParams(
            dimension_semantics=("parallel",),
            vmem_limit_bytes=32 * 1024 * 1024),
        cost_estimate=pl.CostEstimate(flops=flops, transcendentals=transcendentals,
                                      bytes_accessed=bytes_accessed),
    )(aug, add, params["patch_w"],
      params["ln1_w"], params["ln1_b"], wq, wk, wv, wproj_h, params["bproj"],
      params["ln2_w"], params["ln2_b"], params["w1"], params["b1"], params["w2"], params["b2"],
      params["norm_w"], params["norm_b"])

    return out.reshape(B, d)                         # fc = Identity (num_classes=0)


# --------------------------- deterministic init ------------------------------
def init_params(key):
    keys = iter(jax.random.split(key, 8))

    def tn(shape):  # trunc_normal_(std=0.02)
        return 0.02 * jax.random.truncated_normal(next(keys), -2.0, 2.0, shape, jnp.float32)

    return {
        # patch embed (Conv2d kernel=stride=PATCH reshaped to (C*p*p, D)) + bias
        "patch_w": tn((IN_CHANS * PATCH * PATCH, EMBED_DIM)),
        "patch_b": jnp.zeros((1, EMBED_DIM), jnp.float32),
        "cls_token": tn((1, 1, EMBED_DIM)),
        "pos_embed": tn((1, N_TOKENS, EMBED_DIM)),
        "norm_w": jnp.ones((1, EMBED_DIM), jnp.float32),
        "norm_b": jnp.zeros((1, EMBED_DIM), jnp.float32),
        # per-block weights stacked on a leading DEPTH axis (statically unrolled in-kernel)
        "ln1_w": jnp.ones((DEPTH, 1, EMBED_DIM), jnp.float32),
        "ln1_b": jnp.zeros((DEPTH, 1, EMBED_DIM), jnp.float32),
        "wqkv": tn((DEPTH, EMBED_DIM, 3 * EMBED_DIM)),      # qkv_bias=False -> no bias
        "wproj": tn((DEPTH, EMBED_DIM, EMBED_DIM)),
        "bproj": jnp.zeros((DEPTH, 1, EMBED_DIM), jnp.float32),
        "ln2_w": jnp.ones((DEPTH, 1, EMBED_DIM), jnp.float32),
        "ln2_b": jnp.zeros((DEPTH, 1, EMBED_DIM), jnp.float32),
        "w1": tn((DEPTH, EMBED_DIM, MLP_HIDDEN)),
        "b1": jnp.zeros((DEPTH, 1, MLP_HIDDEN), jnp.float32),
        "w2": tn((DEPTH, MLP_HIDDEN, EMBED_DIM)),
        "b2": jnp.zeros((DEPTH, 1, EMBED_DIM), jnp.float32),
    }


if __name__ == "__main__":
    key = jax.random.PRNGKey(0)
    pkey, xkey = jax.random.split(key)
    params = init_params(pkey)
    x = jax.random.normal(xkey, (BATCH, IN_CHANS, IMG, IMG), jnp.float32)  # NCHW, like PyTorch
    out = vit_forward(x, params)
    jax.block_until_ready(out)
    assert out.shape == (BATCH, EMBED_DIM) and out.dtype == jnp.float32
    print("KERNEL_OK")
</pallas_src>

<mosaic_0001>
module attributes {stable_mosaic.version = 11 : i64} {
  func.func @vit_fused_kernel(%arg0: i32, %arg1: memref<1x5x192xf32, #tpu.memory_space<vmem>>, %arg2: memref<5x32xf32, #tpu.memory_space<vmem>>, %arg3: memref<192x32xf32, #tpu.memory_space<vmem>>, %arg4: memref<2x1x32xf32, #tpu.memory_space<vmem>>, %arg5: memref<2x1x32xf32, #tpu.memory_space<vmem>>, %arg6: memref<2x4x32x8xf32, #tpu.memory_space<vmem>>, %arg7: memref<2x4x32x8xf32, #tpu.memory_space<vmem>>, %arg8: memref<2x4x32x8xf32, #tpu.memory_space<vmem>>, %arg9: memref<2x4x8x32xf32, #tpu.memory_space<vmem>>, %arg10: memref<2x1x32xf32, #tpu.memory_space<vmem>>, %arg11: memref<2x1x32xf32, #tpu.memory_space<vmem>>, %arg12: memref<2x1x32xf32, #tpu.memory_space<vmem>>, %arg13: memref<2x32x128xf32, #tpu.memory_space<vmem>>, %arg14: memref<2x1x128xf32, #tpu.memory_space<vmem>>, %arg15: memref<2x128x32xf32, #tpu.memory_space<vmem>>, %arg16: memref<2x1x32xf32, #tpu.memory_space<vmem>>, %arg17: memref<1x32xf32, #tpu.memory_space<vmem>>, %arg18: memref<1x32xf32, #tpu.memory_space<vmem>>, %arg19: memref<1x1x32xf32, #tpu.memory_space<vmem>>) attributes {dimension_semantics = [#tpu.dimension_semantics<parallel>], iteration_bounds = array<i64: 2>, scalar_prefetch = 0 : i64, scratch_operands = 0 : i64, tpu.core_type = #tpu.core_type<tc>, window_params = [{transform_indices = @transform_0, window_bounds = array<i64: 1, 5, 192>}, {pipeline_mode = #tpu.pipeline_mode<synchronous>, transform_indices = @transform_1, window_bounds = array<i64: 5, 32>}, {pipeline_mode = #tpu.pipeline_mode<synchronous>, transform_indices = @transform_2, window_bounds = array<i64: 192, 32>}, {pipeline_mode = #tpu.pipeline_mode<synchronous>, transform_indices = @transform_3, window_bounds = array<i64: 2, 1, 32>}, {pipeline_mode = #tpu.pipeline_mode<synchronous>, transform_indices = @transform_4, window_bounds = array<i64: 2, 1, 32>}, {pipeline_mode = #tpu.pipeline_mode<synchronous>, transform_indices = @transform_5, window_bounds = array<i64: 2, 4, 32, 8>}, {pipeline_mode = #tpu.pipeline_mode<synchronous>, transform_indices = @transform_6, window_bounds = array<i64: 2, 4, 32, 8>}, {pipeline_mode = #tpu.pipeline_mode<synchronous>, transform_indices = @transform_7, window_bounds = array<i64: 2, 4, 32, 8>}, {pipeline_mode = #tpu.pipeline_mode<synchronous>, transform_indices = @transform_8, window_bounds = array<i64: 2, 4, 8, 32>}, {pipeline_mode = #tpu.pipeline_mode<synchronous>, transform_indices = @transform_9, window_bounds = array<i64: 2, 1, 32>}, {pipeline_mode = #tpu.pipeline_mode<synchronous>, transform_indices = @transform_10, window_bounds = array<i64: 2, 1, 32>}, {pipeline_mode = #tpu.pipeline_mode<synchronous>, transform_indices = @transform_11, window_bounds = array<i64: 2, 1, 32>}, {pipeline_mode = #tpu.pipeline_mode<synchronous>, transform_indices = @transform_12, window_bounds = array<i64: 2, 32, 128>}, {pipeline_mode = #tpu.pipeline_mode<synchronous>, transform_indices = @transform_13, window_bounds = array<i64: 2, 1, 128>}, {pipeline_mode = #tpu.pipeline_mode<synchronous>, transform_indices = @transform_14, window_bounds = array<i64: 2, 128, 32>}, {pipeline_mode = #tpu.pipeline_mode<synchronous>, transform_indices = @transform_15, window_bounds = array<i64: 2, 1, 32>}, {pipeline_mode = #tpu.pipeline_mode<synchronous>, transform_indices = @transform_16, window_bounds = array<i64: 1, 32>}, {pipeline_mode = #tpu.pipeline_mode<synchronous>, transform_indices = @transform_17, window_bounds = array<i64: 1, 32>}, {transform_indices = @transform_18, window_bounds = array<i64: 1, 1, 32>}]} {
    %c0 = arith.constant 0 : index
    %c0_0 = arith.constant 0 : index
    %c0_1 = arith.constant 0 : index
    %0 = vector.load %arg1[%c0, %c0_0, %c0_1] : memref<1x5x192xf32, #tpu.memory_space<vmem>>, vector<1x5x192xf32>
    %1 = vector.shape_cast %0 : vector<1x5x192xf32> to vector<5x192xf32>
    %c0_2 = arith.constant 0 : index
    %c0_3 = arith.constant 0 : index
    %2 = vector.load %arg3[%c0_2, %c0_3] : memref<192x32xf32, #tpu.memory_space<vmem>>, vector<192x32xf32>
    %cst = arith.constant dense<0.000000e+00> : vector<5x32xf32>
    %3 = tpu.matmul %1, %2, %cst {dimension_numbers = #tpu.dot_dimension_numbers<[1], [0], [0], [1], [0, 0, 1, 1], [], []>} : vector<5x192xf32>, vector<192x32xf32>, vector<5x32xf32> -> vector<5x32xf32>
    %c0_4 = arith.constant 0 : index
    %c0_5 = arith.constant 0 : index
    %4 = vector.load %arg2[%c0_4, %c0_5] : memref<5x32xf32, #tpu.memory_space<vmem>>, vector<5x32xf32>
    %5 = arith.addf %3, %4 : vector<5x32xf32>
    %c0_6 = arith.constant 0 : index
    %c0_7 = arith.constant 0 : index
    %c0_8 = arith.constant 0 : index
    %6 = vector.load %arg4[%c0_6, %c0_7, %c0_8] : memref<2x1x32xf32, #tpu.memory_space<vmem>>, vector<1x1x32xf32>
    %7 = vector.shape_cast %6 : vector<1x1x32xf32> to vector<1x32xf32>
    %c0_9 = arith.constant 0 : index
    %c0_10 = arith.constant 0 : index
    %c0_11 = arith.constant 0 : index
    %8 = vector.load %arg5[%c0_9, %c0_10, %c0_11] : memref<2x1x32xf32, #tpu.memory_space<vmem>>, vector<1x1x32xf32>
    %9 = vector.shape_cast %8 : vector<1x1x32xf32> to vector<1x32xf32>
    %cst_12 = arith.constant dense<0.000000e+00> : vector<5xf32>
    %10 = vector.multi_reduction <add>, %5, %cst_12 [1] : vector<5x32xf32> to vector<5xf32>
    %11 = vector.shape_cast %10 : vector<5xf32> to vector<5x1xf32>
    %cst_13 = arith.constant 3.200000e+01 : f32
    %12 = vector.broadcast %cst_13 : f32 to vector<5x1xf32>
    %13 = arith.divf %11, %12 : vector<5x1xf32>
    %14 = vector.broadcast %13 : vector<5x1xf32> to vector<5x32xf32>
    %15 = arith.subf %5, %14 : vector<5x32xf32>
    %16 = arith.mulf %15, %15 : vector<5x32xf32>
    %cst_14 = arith.constant dense<0.000000e+00> : vector<5xf32>
    %17 = vector.multi_reduction <add>, %16, %cst_14 [1] : vector<5x32xf32> to vector<5xf32>
    %18 = vector.shape_cast %17 : vector<5xf32> to vector<5x1xf32>
    %cst_15 = arith.constant 3.200000e+01 : f32
    %19 = vector.broadcast %cst_15 : f32 to vector<5x1xf32>
    %20 = arith.divf %18, %19 : vector<5x1xf32>
    %21 = vector.broadcast %13 : vector<5x1xf32> to vector<5x32xf32>
    %22 = arith.subf %5, %21 : vector<5x32xf32>
    %cst_16 = arith.constant 9.99999974E-6 : f32
    %23 = vector.broadcast %cst_16 : f32 to vector<5x1xf32>
    %24 = arith.addf %20, %23 : vector<5x1xf32>
    %25 = math.rsqrt %24 : vector<5x1xf32>
    %26 = vector.broadcast %25 : vector<5x1xf32> to vector<5x32xf32>
    %27 = arith.mulf %22, %26 : vector<5x32xf32>
    %28 = vector.broadcast %7 : vector<1x32xf32> to vector<5x32xf32>
    %29 = arith.mulf %27, %28 : vector<5x32xf32>
    %30 = vector.broadcast %9 : vector<1x32xf32> to vector<5x32xf32>
    %31 = arith.addf %29, %30 : vector<5x32xf32>
    %32 = vector.shape_cast %31 : vector<5x32xf32> to vector<1x5x32xf32>
    %33 = vector.shape_cast %32 : vector<1x5x32xf32> to vector<1x5x32xf32>
    %34 = vector.broadcast %33 : vector<1x5x32xf32> to vector<4x5x32xf32>
    %c0_17 = arith.constant 0 : index
    %c0_18 = arith.constant 0 : index
    %c0_19 = arith.constant 0 : index
    %c0_20 = arith.constant 0 : index
    %35 = vector.load %arg6[%c0_17, %c0_18, %c0_19, %c0_20] : memref<2x4x32x8xf32, #tpu.memory_space<vmem>>, vector<1x4x32x8xf32>
    %36 = vector.shape_cast %35 : vector<1x4x32x8xf32> to vector<4x32x8xf32>
    "tpu.trace_start"() <{level = 10 : i32, message = "hnd,hde->hne"}> : () -> ()
    %cst_21 = arith.constant dense<0.000000e+00> : vector<4x5x8xf32>
    %37 = tpu.matmul %34, %36, %cst_21 {dimension_numbers = #tpu.dot_dimension_numbers<[2], [1], [1], [2], [0, 0, 0, 1, 1, 2], [0], [0]>} : vector<4x5x32xf32>, vector<4x32x8xf32>, vector<4x5x8xf32> -> vector<4x5x8xf32>
    "tpu.trace_stop"() : () -> ()
    %c0_22 = arith.constant 0 : index
    %c0_23 = arith.constant 0 : index
    %c0_24 = arith.constant 0 : index
    %c0_25 = arith.constant 0 : index
    %38 = vector.load %arg7[%c0_22, %c0_23, %c0_24, %c0_25] : memref<2x4x32x8xf32, #tpu.memory_space<vmem>>, vector<1x4x32x8xf32>
    %39 = vector.shape_cast %38 : vector<1x4x32x8xf32> to vector<4x32x8xf32>
    "tpu.trace_start"() <{level = 10 : i32, message = "hnd,hde->hne"}> : () -> ()
    %cst_26 = arith.constant dense<0.000000e+00> : vector<4x5x8xf32>
    %40 = tpu.matmul %34, %39, %cst_26 {dimension_numbers = #tpu.dot_dimension_numbers<[2], [1], [1], [2], [0, 0, 0, 1, 1, 2], [0], [0]>} : vector<4x5x32xf32>, vector<4x32x8xf32>, vector<4x5x8xf32> -> vector<4x5x8xf32>
    "tpu.trace_stop"() : () -> ()
    %c0_27 = arith.constant 0 : index
    %c0_28 = arith.constant 0 : index
    %c0_29 = arith.constant 0 : index
    %c0_30 = arith.constant 0 : index
    %41 = vector.load %arg8[%c0_27, %c0_28, %c0_29, %c0_30] : memref<2x4x32x8xf32, #tpu.memory_space<vmem>>, vector<1x4x32x8xf32>
    %42 = vector.shape_cast %41 : vector<1x4x32x8xf32> to vector<4x32x8xf32>
    "tpu.trace_start"() <{level = 10 : i32, message = "hnd,hde->hne"}> : () -> ()
    %cst_31 = arith.constant dense<0.000000e+00> : vector<4x5x8xf32>
    %43 = tpu.matmul %34, %42, %cst_31 {dimension_numbers = #tpu.dot_dimension_numbers<[2], [1], [1], [2], [0, 0, 0, 1, 1, 2], [0], [0]>} : vector<4x5x32xf32>, vector<4x32x8xf32>, vector<4x5x8xf32> -> vector<4x5x8xf32>
    "tpu.trace_stop"() : () -> ()
    "tpu.trace_start"() <{level = 10 : i32, message = "hqe,hke->hqk"}> : () -> ()
    %cst_32 = arith.constant dense<0.000000e+00> : vector<4x5x5xf32>
    %44 = tpu.matmul %37, %40, %cst_32 {dimension_numbers = #tpu.dot_dimension_numbers<[2], [2], [1], [1], [0, 0, 0, 1, 1, 1], [0], [0]>} : vector<4x5x8xf32>, vector<4x5x8xf32>, vector<4x5x5xf32> -> vector<4x5x5xf32>
    "tpu.trace_stop"() : () -> ()
    %cst_33 = arith.constant dense<0xFF800000> : vector<4x5xf32>
    %45 = vector.multi_reduction <maximumf>, %44, %cst_33 [2] : vector<4x5x5xf32> to vector<4x5xf32>
    %46 = vector.shape_cast %45 : vector<4x5xf32> to vector<4x5x1xf32>
    %47 = vector.broadcast %46 : vector<4x5x1xf32> to vector<4x5x5xf32>
    %48 = arith.subf %44, %47 : vector<4x5x5xf32>
    %49 = math.exp %48 : vector<4x5x5xf32>
    %cst_34 = arith.constant dense<0.000000e+00> : vector<4x5xf32>
    %50 = vector.multi_reduction <add>, %49, %cst_34 [2] : vector<4x5x5xf32> to vector<4x5xf32>
    %51 = vector.shape_cast %50 : vector<4x5xf32> to vector<4x5x1xf32>
    %52 = tpu.reciprocal %51 {approx = true} : vector<4x5x1xf32> -> vector<4x5x1xf32>
    %53 = vector.broadcast %52 : vector<4x5x1xf32> to vector<4x5x5xf32>
    %54 = arith.mulf %49, %53 : vector<4x5x5xf32>
    "tpu.trace_start"() <{level = 10 : i32, message = "hqk,hke->hqe"}> : () -> ()
    %cst_35 = arith.constant dense<0.000000e+00> : vector<4x5x8xf32>
    %55 = tpu.matmul %54, %43, %cst_35 {dimension_numbers = #tpu.dot_dimension_numbers<[2], [1], [1], [2], [0, 0, 0, 1, 1, 2], [0], [0]>} : vector<4x5x5xf32>, vector<4x5x8xf32>, vector<4x5x8xf32> -> vector<4x5x8xf32>
    "tpu.trace_stop"() : () -> ()
    %c0_36 = arith.constant 0 : index
    %c0_37 = arith.constant 0 : index
    %c0_38 = arith.constant 0 : index
    %c0_39 = arith.constant 0 : index
    %56 = vector.load %arg9[%c0_36, %c0_37, %c0_38, %c0_39] : memref<2x4x8x32xf32, #tpu.memory_space<vmem>>, vector<1x4x8x32xf32>
    %57 = vector.shape_cast %56 : vector<1x4x8x32xf32> to vector<4x8x32xf32>
    "tpu.trace_start"() <{level = 10 : i32, message = "hne,hed->hnd"}> : () -> ()
    %cst_40 = arith.constant dense<0.000000e+00> : vector<4x5x32xf32>
    %58 = tpu.matmul %55, %57, %cst_40 {dimension_numbers = #tpu.dot_dimension_numbers<[2], [1], [1], [2], [0, 0, 0, 1, 1, 2], [0], [0]>} : vector<4x5x8xf32>, vector<4x8x32xf32>, vector<4x5x32xf32> -> vector<4x5x32xf32>
    "tpu.trace_stop"() : () -> ()
    %cst_41 = arith.constant dense<0.000000e+00> : vector<5x32xf32>
    %59 = vector.multi_reduction <add>, %58, %cst_41 [0] : vector<4x5x32xf32> to vector<5x32xf32>
    %c0_42 = arith.constant 0 : index
    %c0_43 = arith.constant 0 : index
    %c0_44 = arith.constant 0 : index
    %60 = vector.load %arg10[%c0_42, %c0_43, %c0_44] : memref<2x1x32xf32, #tpu.memory_space<vmem>>, vector<1x1x32xf32>
    %61 = vector.shape_cast %60 : vector<1x1x32xf32> to vector<1x32xf32>
    %62 = vector.broadcast %61 : vector<1x32xf32> to vector<5x32xf32>
    %63 = arith.addf %59, %62 : vector<5x32xf32>
    %64 = arith.addf %5, %63 : vector<5x32xf32>
    %c0_45 = arith.constant 0 : index
    %c0_46 = arith.constant 0 : index
    %c0_47 = arith.constant 0 : index
    %65 = vector.load %arg11[%c0_45, %c0_46, %c0_47] : memref<2x1x32xf32, #tpu.memory_space<vmem>>, vector<1x1x32xf32>
    %66 = vector.shape_cast %65 : vector<1x1x32xf32> to vector<1x32xf32>
    %c0_48 = arith.constant 0 : index
    %c0_49 = arith.constant 0 : index
    %c0_50 = arith.constant 0 : index
    %67 = vector.load %arg12[%c0_48, %c0_49, %c0_50] : memref<2x1x32xf32, #tpu.memory_space<vmem>>, vector<1x1x32xf32>
    %68 = vector.shape_cast %67 : vector<1x1x32xf32> to vector<1x32xf32>
    %cst_51 = arith.constant dense<0.000000e+00> : vector<5xf32>
    %69 = vector.multi_reduction <add>, %64, %cst_51 [1] : vector<5x32xf32> to vector<5xf32>
    %70 = vector.shape_cast %69 : vector<5xf32> to vector<5x1xf32>
    %cst_52 = arith.constant 3.200000e+01 : f32
    %71 = vector.broadcast %cst_52 : f32 to vector<5x1xf32>
    %72 = arith.divf %70, %71 : vector<5x1xf32>
    %73 = vector.broadcast %72 : vector<5x1xf32> to vector<5x32xf32>
    %74 = arith.subf %64, %73 : vector<5x32xf32>
    %75 = arith.mulf %74, %74 : vector<5x32xf32>
    %cst_53 = arith.constant dense<0.000000e+00> : vector<5xf32>
    %76 = vector.multi_reduction <add>, %75, %cst_53 [1] : vector<5x32xf32> to vector<5xf32>
    %77 = vector.shape_cast %76 : vector<5xf32> to vector<5x1xf32>
    %cst_54 = arith.constant 3.200000e+01 : f32
    %78 = vector.broadcast %cst_54 : f32 to vector<5x1xf32>
    %79 = arith.divf %77, %78 : vector<5x1xf32>
    %80 = vector.broadcast %72 : vector<5x1xf32> to vector<5x32xf32>
    %81 = arith.subf %64, %80 : vector<5x32xf32>
    %cst_55 = arith.constant 9.99999974E-6 : f32
    %82 = vector.broadcast %cst_55 : f32 to vector<5x1xf32>
    %83 = arith.addf %79, %82 : vector<5x1xf32>
    %84 = math.rsqrt %83 : vector<5x1xf32>
    %85 = vector.broadcast %84 : vector<5x1xf32> to vector<5x32xf32>
    %86 = arith.mulf %81, %85 : vector<5x32xf32>
    %87 = vector.broadcast %66 : vector<1x32xf32> to vector<5x32xf32>
    %88 = arith.mulf %86, %87 : vector<5x32xf32>
    %89 = vector.broadcast %68 : vector<1x32xf32> to vector<5x32xf32>
    %90 = arith.addf %88, %89 : vector<5x32xf32>
    %c0_56 = arith.constant 0 : index
    %c0_57 = arith.constant 0 : index
    %c0_58 = arith.constant 0 : index
    %91 = vector.load %arg13[%c0_56, %c0_57, %c0_58] : memref<2x32x128xf32, #tpu.memory_space<vmem>>, vector<1x32x128xf32>
    %92 = vector.shape_cast %91 : vector<1x32x128xf32> to vector<32x128xf32>
    %cst_59 = arith.constant dense<0.000000e+00> : vector<5x128xf32>
    %93 = tpu.matmul %90, %92, %cst_59 {dimension_numbers = #tpu.dot_dimension_numbers<[1], [0], [0], [1], [0, 0, 1, 1], [], []>} : vector<5x32xf32>, vector<32x128xf32>, vector<5x128xf32> -> vector<5x128xf32>
    %c0_60 = arith.constant 0 : index
    %c0_61 = arith.constant 0 : index
    %c0_62 = arith.constant 0 : index
    %94 = vector.load %arg14[%c0_60, %c0_61, %c0_62] : memref<2x1x128xf32, #tpu.memory_space<vmem>>, vector<1x1x128xf32>
    %95 = vector.shape_cast %94 : vector<1x1x128xf32> to vector<1x128xf32>
    %96 = vector.broadcast %95 : vector<1x128xf32> to vector<5x128xf32>
    %97 = arith.addf %93, %96 : vector<5x128xf32>
    %cst_63 = arith.constant 5.000000e-01 : f32
    %98 = vector.broadcast %cst_63 : f32 to vector<5x128xf32>
    %99 = arith.mulf %98, %97 : vector<5x128xf32>
    %cst_64 = arith.constant 0.707106769 : f32
    %100 = vector.broadcast %cst_64 : f32 to vector<5x128xf32>
    %101 = arith.mulf %97, %100 : vector<5x128xf32>
    %102 = math.erf %101 : vector<5x128xf32>
    %cst_65 = arith.constant 1.000000e+00 : f32
    %103 = vector.broadcast %cst_65 : f32 to vector<5x128xf32>
    %104 = arith.addf %103, %102 : vector<5x128xf32>
    %105 = arith.mulf %99, %104 : vector<5x128xf32>
    %c0_66 = arith.constant 0 : index
    %c0_67 = arith.constant 0 : index
    %c0_68 = arith.constant 0 : index
    %106 = vector.load %arg15[%c0_66, %c0_67, %c0_68] : memref<2x128x32xf32, #tpu.memory_space<vmem>>, vector<1x128x32xf32>
    %107 = vector.shape_cast %106 : vector<1x128x32xf32> to vector<128x32xf32>
    %cst_69 = arith.constant dense<0.000000e+00> : vector<5x32xf32>
    %108 = tpu.matmul %105, %107, %cst_69 {dimension_numbers = #tpu.dot_dimension_numbers<[1], [0], [0], [1], [0, 0, 1, 1], [], []>} : vector<5x128xf32>, vector<128x32xf32>, vector<5x32xf32> -> vector<5x32xf32>
    %c0_70 = arith.constant 0 : index
    %c0_71 = arith.constant 0 : index
    %c0_72 = arith.constant 0 : index
    %109 = vector.load %arg16[%c0_70, %c0_71, %c0_72] : memref<2x1x32xf32, #tpu.memory_space<vmem>>, vector<1x1x32xf32>
    %110 = vector.shape_cast %109 : vector<1x1x32xf32> to vector<1x32xf32>
    %111 = vector.broadcast %110 : vector<1x32xf32> to vector<5x32xf32>
    %112 = arith.addf %108, %111 : vector<5x32xf32>
    %113 = arith.addf %64, %112 : vector<5x32xf32>
    %c1 = arith.constant 1 : index
    %c0_73 = arith.constant 0 : index
    %c0_74 = arith.constant 0 : index
    %114 = vector.load %arg4[%c1, %c0_73, %c0_74] : memref<2x1x32xf32, #tpu.memory_space<vmem>>, vector<1x1x32xf32>
    %115 = vector.shape_cast %114 : vector<1x1x32xf32> to vector<1x32xf32>
    %c1_75 = arith.constant 1 : index
    %c0_76 = arith.constant 0 : index
    %c0_77 = arith.constant 0 : index
    %116 = vector.load %arg5[%c1_75, %c0_76, %c0_77] : memref<2x1x32xf32, #tpu.memory_space<vmem>>, vector<1x1x32xf32>
    %117 = vector.shape_cast %116 : vector<1x1x32xf32> to vector<1x32xf32>
    %cst_78 = arith.constant dense<0.000000e+00> : vector<5xf32>
    %118 = vector.multi_reduction <add>, %113, %cst_78 [1] : vector<5x32xf32> to vector<5xf32>
    %119 = vector.shape_cast %118 : vector<5xf32> to vector<5x1xf32>
    %cst_79 = arith.constant 3.200000e+01 : f32
    %120 = vector.broadcast %cst_79 : f32 to vector<5x1xf32>
    %121 = arith.divf %119, %120 : vector<5x1xf32>
    %122 = vector.broadcast %121 : vector<5x1xf32> to vector<5x32xf32>
    %123 = arith.subf %113, %122 : vector<5x32xf32>
    %124 = arith.mulf %123, %123 : vector<5x32xf32>
    %cst_80 = arith.constant dense<0.000000e+00> : vector<5xf32>
    %125 = vector.multi_reduction <add>, %124, %cst_80 [1] : vector<5x32xf32> to vector<5xf32>
    %126 = vector.shape_cast %125 : vector<5xf32> to vector<5x1xf32>
    %cst_81 = arith.constant 3.200000e+01 : f32
    %127 = vector.broadcast %cst_81 : f32 to vector<5x1xf32>
    %128 = arith.divf %126, %127 : vector<5x1xf32>
    %129 = vector.broadcast %121 : vector<5x1xf32> to vector<5x32xf32>
    %130 = arith.subf %113, %129 : vector<5x32xf32>
    %cst_82 = arith.constant 9.99999974E-6 : f32
    %131 = vector.broadcast %cst_82 : f32 to vector<5x1xf32>
    %132 = arith.addf %128, %131 : vector<5x1xf32>
    %133 = math.rsqrt %132 : vector<5x1xf32>
    %134 = vector.broadcast %133 : vector<5x1xf32> to vector<5x32xf32>
    %135 = arith.mulf %130, %134 : vector<5x32xf32>
    %136 = vector.broadcast %115 : vector<1x32xf32> to vector<5x32xf32>
    %137 = arith.mulf %135, %136 : vector<5x32xf32>
    %138 = vector.broadcast %117 : vector<1x32xf32> to vector<5x32xf32>
    %139 = arith.addf %137, %138 : vector<5x32xf32>
    %140 = vector.shape_cast %139 : vector<5x32xf32> to vector<1x5x32xf32>
    %141 = vector.shape_cast %140 : vector<1x5x32xf32> to vector<1x5x32xf32>
    %142 = vector.broadcast %141 : vector<1x5x32xf32> to vector<4x5x32xf32>
    %c1_83 = arith.constant 1 : index
    %c0_84 = arith.constant 0 : index
    %c0_85 = arith.constant 0 : index
    %c0_86 = arith.constant 0 : index
    %143 = vector.load %arg6[%c1_83, %c0_84, %c0_85, %c0_86] : memref<2x4x32x8xf32, #tpu.memory_space<vmem>>, vector<1x4x32x8xf32>
    %144 = vector.shape_cast %143 : vector<1x4x32x8xf32> to vector<4x32x8xf32>
    "tpu.trace_start"() <{level = 10 : i32, message = "hnd,hde->hne"}> : () -> ()
    %cst_87 = arith.constant dense<0.000000e+00> : vector<4x5x8xf32>
    %145 = tpu.matmul %142, %144, %cst_87 {dimension_numbers = #tpu.dot_dimension_numbers<[2], [1], [1], [2], [0, 0, 0, 1, 1, 2], [0], [0]>} : vector<4x5x32xf32>, vector<4x32x8xf32>, vector<4x5x8xf32> -> vector<4x5x8xf32>
    "tpu.trace_stop"() : () -> ()
    %c1_88 = arith.constant 1 : index
    %c0_89 = arith.constant 0 : index
    %c0_90 = arith.constant 0 : index
    %c0_91 = arith.constant 0 : index
    %146 = vector.load %arg7[%c1_88, %c0_89, %c0_90, %c0_91] : memref<2x4x32x8xf32, #tpu.memory_space<vmem>>, vector<1x4x32x8xf32>
    %147 = vector.shape_cast %146 : vector<1x4x32x8xf32> to vector<4x32x8xf32>
    "tpu.trace_start"() <{level = 10 : i32, message = "hnd,hde->hne"}> : () -> ()
    %cst_92 = arith.constant dense<0.000000e+00> : vector<4x5x8xf32>
    %148 = tpu.matmul %142, %147, %cst_92 {dimension_numbers = #tpu.dot_dimension_numbers<[2], [1], [1], [2], [0, 0, 0, 1, 1, 2], [0], [0]>} : vector<4x5x32xf32>, vector<4x32x8xf32>, vector<4x5x8xf32> -> vector<4x5x8xf32>
    "tpu.trace_stop"() : () -> ()
    %c1_93 = arith.constant 1 : index
    %c0_94 = arith.constant 0 : index
    %c0_95 = arith.constant 0 : index
    %c0_96 = arith.constant 0 : index
    %149 = vector.load %arg8[%c1_93, %c0_94, %c0_95, %c0_96] : memref<2x4x32x8xf32, #tpu.memory_space<vmem>>, vector<1x4x32x8xf32>
    %150 = vector.shape_cast %149 : vector<1x4x32x8xf32> to vector<4x32x8xf32>
    "tpu.trace_start"() <{level = 10 : i32, message = "hnd,hde->hne"}> : () -> ()
    %cst_97 = arith.constant dense<0.000000e+00> : vector<4x5x8xf32>
    %151 = tpu.matmul %142, %150, %cst_97 {dimension_numbers = #tpu.dot_dimension_numbers<[2], [1], [1], [2], [0, 0, 0, 1, 1, 2], [0], [0]>} : vector<4x5x32xf32>, vector<4x32x8xf32>, vector<4x5x8xf32> -> vector<4x5x8xf32>
    "tpu.trace_stop"() : () -> ()
    "tpu.trace_start"() <{level = 10 : i32, message = "hqe,hke->hqk"}> : () -> ()
    %cst_98 = arith.constant dense<0.000000e+00> : vector<4x5x5xf32>
    %152 = tpu.matmul %145, %148, %cst_98 {dimension_numbers = #tpu.dot_dimension_numbers<[2], [2], [1], [1], [0, 0, 0, 1, 1, 1], [0], [0]>} : vector<4x5x8xf32>, vector<4x5x8xf32>, vector<4x5x5xf32> -> vector<4x5x5xf32>
    "tpu.trace_stop"() : () -> ()
    %cst_99 = arith.constant dense<0xFF800000> : vector<4x5xf32>
    %153 = vector.multi_reduction <maximumf>, %152, %cst_99 [2] : vector<4x5x5xf32> to vector<4x5xf32>
    %154 = vector.shape_cast %153 : vector<4x5xf32> to vector<4x5x1xf32>
    %155 = vector.broadcast %154 : vector<4x5x1xf32> to vector<4x5x5xf32>
    %156 = arith.subf %152, %155 : vector<4x5x5xf32>
    %157 = math.exp %156 : vector<4x5x5xf32>
    %cst_100 = arith.constant dense<0.000000e+00> : vector<4x5xf32>
    %158 = vector.multi_reduction <add>, %157, %cst_100 [2] : vector<4x5x5xf32> to vector<4x5xf32>
    %159 = vector.shape_cast %158 : vector<4x5xf32> to vector<4x5x1xf32>
    %160 = tpu.reciprocal %159 {approx = true} : vector<4x5x1xf32> -> vector<4x5x1xf32>
    %161 = vector.broadcast %160 : vector<4x5x1xf32> to vector<4x5x5xf32>
    %162 = arith.mulf %157, %161 : vector<4x5x5xf32>
    "tpu.trace_start"() <{level = 10 : i32, message = "hqk,hke->hqe"}> : () -> ()
    %cst_101 = arith.constant dense<0.000000e+00> : vector<4x5x8xf32>
    %163 = tpu.matmul %162, %151, %cst_101 {dimension_numbers = #tpu.dot_dimension_numbers<[2], [1], [1], [2], [0, 0, 0, 1, 1, 2], [0], [0]>} : vector<4x5x5xf32>, vector<4x5x8xf32>, vector<4x5x8xf32> -> vector<4x5x8xf32>
    "tpu.trace_stop"() : () -> ()
    %c1_102 = arith.constant 1 : index
    %c0_103 = arith.constant 0 : index
    %c0_104 = arith.constant 0 : index
    %c0_105 = arith.constant 0 : index
    %164 = vector.load %arg9[%c1_102, %c0_103, %c0_104, %c0_105] : memref<2x4x8x32xf32, #tpu.memory_space<vmem>>, vector<1x4x8x32xf32>
    %165 = vector.shape_cast %164 : vector<1x4x8x32xf32> to vector<4x8x32xf32>
    "tpu.trace_start"() <{level = 10 : i32, message = "hne,hed->hnd"}> : () -> ()
    %cst_106 = arith.constant dense<0.000000e+00> : vector<4x5x32xf32>
    %166 = tpu.matmul %163, %165, %cst_106 {dimension_numbers = #tpu.dot_dimension_numbers<[2], [1], [1], [2], [0, 0, 0, 1, 1, 2], [0], [0]>} : vector<4x5x8xf32>, vector<4x8x32xf32>, vector<4x5x32xf32> -> vector<4x5x32xf32>
    "tpu.trace_stop"() : () -> ()
    %cst_107 = arith.constant dense<0.000000e+00> : vector<5x32xf32>
    %167 = vector.multi_reduction <add>, %166, %cst_107 [0] : vector<4x5x32xf32> to vector<5x32xf32>
    %c1_108 = arith.constant 1 : index
    %c0_109 = arith.constant 0 : index
    %c0_110 = arith.constant 0 : index
    %168 = vector.load %arg10[%c1_108, %c0_109, %c0_110] : memref<2x1x32xf32, #tpu.memory_space<vmem>>, vector<1x1x32xf32>
    %169 = vector.shape_cast %168 : vector<1x1x32xf32> to vector<1x32xf32>
    %170 = vector.broadcast %169 : vector<1x32xf32> to vector<5x32xf32>
    %171 = arith.addf %167, %170 : vector<5x32xf32>
    %172 = arith.addf %113, %171 : vector<5x32xf32>
    %c1_111 = arith.constant 1 : index
    %c0_112 = arith.constant 0 : index
    %c0_113 = arith.constant 0 : index
    %173 = vector.load %arg11[%c1_111, %c0_112, %c0_113] : memref<2x1x32xf32, #tpu.memory_space<vmem>>, vector<1x1x32xf32>
    %174 = vector.shape_cast %173 : vector<1x1x32xf32> to vector<1x32xf32>
    %c1_114 = arith.constant 1 : index
    %c0_115 = arith.constant 0 : index
    %c0_116 = arith.constant 0 : index
    %175 = vector.load %arg12[%c1_114, %c0_115, %c0_116] : memref<2x1x32xf32, #tpu.memory_space<vmem>>, vector<1x1x32xf32>
    %176 = vector.shape_cast %175 : vector<1x1x32xf32> to vector<1x32xf32>
    %cst_117 = arith.constant dense<0.000000e+00> : vector<5xf32>
    %177 = vector.multi_reduction <add>, %172, %cst_117 [1] : vector<5x32xf32> to vector<5xf32>
    %178 = vector.shape_cast %177 : vector<5xf32> to vector<5x1xf32>
    %cst_118 = arith.constant 3.200000e+01 : f32
    %179 = vector.broadcast %cst_118 : f32 to vector<5x1xf32>
    %180 = arith.divf %178, %179 : vector<5x1xf32>
    %181 = vector.broadcast %180 : vector<5x1xf32> to vector<5x32xf32>
    %182 = arith.subf %172, %181 : vector<5x32xf32>
    %183 = arith.mulf %182, %182 : vector<5x32xf32>
    %cst_119 = arith.constant dense<0.000000e+00> : vector<5xf32>
    %184 = vector.multi_reduction <add>, %183, %cst_119 [1] : vector<5x32xf32> to vector<5xf32>
    %185 = vector.shape_cast %184 : vector<5xf32> to vector<5x1xf32>
    %cst_120 = arith.constant 3.200000e+01 : f32
    %186 = vector.broadcast %cst_120 : f32 to vector<5x1xf32>
    %187 = arith.divf %185, %186 : vector<5x1xf32>
    %188 = vector.broadcast %180 : vector<5x1xf32> to vector<5x32xf32>
    %189 = arith.subf %172, %188 : vector<5x32xf32>
    %cst_121 = arith.constant 9.99999974E-6 : f32
    %190 = vector.broadcast %cst_121 : f32 to vector<5x1xf32>
    %191 = arith.addf %187, %190 : vector<5x1xf32>
    %192 = math.rsqrt %191 : vector<5x1xf32>
    %193 = vector.broadcast %192 : vector<5x1xf32> to vector<5x32xf32>
    %194 = arith.mulf %189, %193 : vector<5x32xf32>
    %195 = vector.broadcast %174 : vector<1x32xf32> to vector<5x32xf32>
    %196 = arith.mulf %194, %195 : vector<5x32xf32>
    %197 = vector.broadcast %176 : vector<1x32xf32> to vector<5x32xf32>
    %198 = arith.addf %196, %197 : vector<5x32xf32>
    %c1_122 = arith.constant 1 : index
    %c0_123 = arith.constant 0 : index
    %c0_124 = arith.constant 0 : index
    %199 = vector.load %arg13[%c1_122, %c0_123, %c0_124] : memref<2x32x128xf32, #tpu.memory_space<vmem>>, vector<1x32x128xf32>
    %200 = vector.shape_cast %199 : vector<1x32x128xf32> to vector<32x128xf32>
    %cst_125 = arith.constant dense<0.000000e+00> : vector<5x128xf32>
    %201 = tpu.matmul %198, %200, %cst_125 {dimension_numbers = #tpu.dot_dimension_numbers<[1], [0], [0], [1], [0, 0, 1, 1], [], []>} : vector<5x32xf32>, vector<32x128xf32>, vector<5x128xf32> -> vector<5x128xf32>
    %c1_126 = arith.constant 1 : index
    %c0_127 = arith.constant 0 : index
    %c0_128 = arith.constant 0 : index
    %202 = vector.load %arg14[%c1_126, %c0_127, %c0_128] : memref<2x1x128xf32, #tpu.memory_space<vmem>>, vector<1x1x128xf32>
    %203 = vector.shape_cast %202 : vector<1x1x128xf32> to vector<1x128xf32>
    %204 = vector.broadcast %203 : vector<1x128xf32> to vector<5x128xf32>
    %205 = arith.addf %201, %204 : vector<5x128xf32>
    %cst_129 = arith.constant 5.000000e-01 : f32
    %206 = vector.broadcast %cst_129 : f32 to vector<5x128xf32>
    %207 = arith.mulf %206, %205 : vector<5x128xf32>
    %cst_130 = arith.constant 0.707106769 : f32
    %208 = vector.broadcast %cst_130 : f32 to vector<5x128xf32>
    %209 = arith.mulf %205, %208 : vector<5x128xf32>
    %210 = math.erf %209 : vector<5x128xf32>
    %cst_131 = arith.constant 1.000000e+00 : f32
    %211 = vector.broadcast %cst_131 : f32 to vector<5x128xf32>
    %212 = arith.addf %211, %210 : vector<5x128xf32>
    %213 = arith.mulf %207, %212 : vector<5x128xf32>
    %c1_132 = arith.constant 1 : index
    %c0_133 = arith.constant 0 : index
    %c0_134 = arith.constant 0 : index
    %214 = vector.load %arg15[%c1_132, %c0_133, %c0_134] : memref<2x128x32xf32, #tpu.memory_space<vmem>>, vector<1x128x32xf32>
    %215 = vector.shape_cast %214 : vector<1x128x32xf32> to vector<128x32xf32>
    %cst_135 = arith.constant dense<0.000000e+00> : vector<5x32xf32>
    %216 = tpu.matmul %213, %215, %cst_135 {dimension_numbers = #tpu.dot_dimension_numbers<[1], [0], [0], [1], [0, 0, 1, 1], [], []>} : vector<5x128xf32>, vector<128x32xf32>, vector<5x32xf32> -> vector<5x32xf32>
    %c1_136 = arith.constant 1 : index
    %c0_137 = arith.constant 0 : index
    %c0_138 = arith.constant 0 : index
    %217 = vector.load %arg16[%c1_136, %c0_137, %c0_138] : memref<2x1x32xf32, #tpu.memory_space<vmem>>, vector<1x1x32xf32>
    %218 = vector.shape_cast %217 : vector<1x1x32xf32> to vector<1x32xf32>
    %219 = vector.broadcast %218 : vector<1x32xf32> to vector<5x32xf32>
    %220 = arith.addf %216, %219 : vector<5x32xf32>
    %221 = arith.addf %172, %220 : vector<5x32xf32>
    %222 = vector.extract_strided_slice %221 {offsets = [0, 0], sizes = [1, 32], strides = [1, 1]} : vector<5x32xf32> to vector<1x32xf32>
    %c0_139 = arith.constant 0 : index
    %c0_140 = arith.constant 0 : index
    %223 = vector.load %arg17[%c0_139, %c0_140] : memref<1x32xf32, #tpu.memory_space<vmem>>, vector<1x32xf32>
    %c0_141 = arith.constant 0 : index
    %c0_142 = arith.constant 0 : index
    %224 = vector.load %arg18[%c0_141, %c0_142] : memref<1x32xf32, #tpu.memory_space<vmem>>, vector<1x32xf32>
    %cst_143 = arith.constant dense<0.000000e+00> : vector<1xf32>
    %225 = vector.multi_reduction <add>, %222, %cst_143 [1] : vector<1x32xf32> to vector<1xf32>
    %226 = vector.shape_cast %225 : vector<1xf32> to vector<1x1xf32>
    %cst_144 = arith.constant 3.200000e+01 : f32
    %227 = vector.broadcast %cst_144 : f32 to vector<1x1xf32>
    %228 = arith.divf %226, %227 : vector<1x1xf32>
    %229 = vector.broadcast %228 : vector<1x1xf32> to vector<1x32xf32>
    %230 = arith.subf %222, %229 : vector<1x32xf32>
    %231 = arith.mulf %230, %230 : vector<1x32xf32>
    %cst_145 = arith.constant dense<0.000000e+00> : vector<1xf32>
    %232 = vector.multi_reduction <add>, %231, %cst_145 [1] : vector<1x32xf32> to vector<1xf32>
    %233 = vector.shape_cast %232 : vector<1xf32> to vector<1x1xf32>
    %cst_146 = arith.constant 3.200000e+01 : f32
    %234 = vector.broadcast %cst_146 : f32 to vector<1x1xf32>
    %235 = arith.divf %233, %234 : vector<1x1xf32>
    %236 = vector.broadcast %228 : vector<1x1xf32> to vector<1x32xf32>
    %237 = arith.subf %222, %236 : vector<1x32xf32>
    %cst_147 = arith.constant 9.99999974E-6 : f32
    %238 = vector.broadcast %cst_147 : f32 to vector<1x1xf32>
    %239 = arith.addf %235, %238 : vector<1x1xf32>
    %240 = math.rsqrt %239 : vector<1x1xf32>
    %241 = vector.broadcast %240 : vector<1x1xf32> to vector<1x32xf32>
    %242 = arith.mulf %237, %241 : vector<1x32xf32>
    %243 = arith.mulf %242, %223 : vector<1x32xf32>
    %244 = arith.addf %243, %224 : vector<1x32xf32>
    %c0_148 = arith.constant 0 : index
    %c0_149 = arith.constant 0 : index
    %c0_150 = arith.constant 0 : index
    %245 = vector.load %arg19[%c0_148, %c0_149, %c0_150] : memref<1x1x32xf32, #tpu.memory_space<vmem>>, vector<1x1x32xf32>
    %246 = vector.shape_cast %245 : vector<1x1x32xf32> to vector<1x32xf32>
    %247 = vector.shape_cast %244 : vector<1x32xf32> to vector<1x1x32xf32>
    tpu.vector_store %arg19[%c0_148, %c0_149, %c0_150], %247 {strides = array<i32>} : memref<1x1x32xf32, #tpu.memory_space<vmem>>, vector<1x1x32xf32>,
    return
  }
  func.func @transform_0(%arg0: i32) -> (i32, i32, i32) {
    %c0_i32 = arith.constant 0 : i32
    %c0_i32_0 = arith.constant 0 : i32
    %c0_i32_1 = arith.constant 0 : i32
    return %arg0, %c0_i32, %c0_i32_0 : i32, i32, i32
  }
  func.func @transform_1(%arg0: i32) -> (i32, i32) {
    %c0_i32 = arith.constant 0 : i32
    %c0_i32_0 = arith.constant 0 : i32
    %c0_i32_1 = arith.constant 0 : i32
    return %c0_i32, %c0_i32_0 : i32, i32
  }
  func.func @transform_2(%arg0: i32) -> (i32, i32) {
    %c0_i32 = arith.constant 0 : i32
    %c0_i32_0 = arith.constant 0 : i32
    %c0_i32_1 = arith.constant 0 : i32
    return %c0_i32, %c0_i32_0 : i32, i32
  }
  func.func @transform_3(%arg0: i32) -> (i32, i32, i32) {
    %c0_i32 = arith.constant 0 : i32
    %c0_i32_0 = arith.constant 0 : i32
    %c0_i32_1 = arith.constant 0 : i32
    %c0_i32_2 = arith.constant 0 : i32
    return %c0_i32, %c0_i32_0, %c0_i32_1 : i32, i32, i32
  }
  func.func @transform_4(%arg0: i32) -> (i32, i32, i32) {
    %c0_i32 = arith.constant 0 : i32
    %c0_i32_0 = arith.constant 0 : i32
    %c0_i32_1 = arith.constant 0 : i32
    %c0_i32_2 = arith.constant 0 : i32
    return %c0_i32, %c0_i32_0, %c0_i32_1 : i32, i32, i32
  }
  func.func @transform_5(%arg0: i32) -> (i32, i32, i32, i32) {
    %c0_i32 = arith.constant 0 : i32
    %c0_i32_0 = arith.constant 0 : i32
    %c0_i32_1 = arith.constant 0 : i32
    %c0_i32_2 = arith.constant 0 : i32
    %c0_i32_3 = arith.constant 0 : i32
    return %c0_i32, %c0_i32_0, %c0_i32_1, %c0_i32_2 : i32, i32, i32, i32
  }
  func.func @transform_6(%arg0: i32) -> (i32, i32, i32, i32) {
    %c0_i32 = arith.constant 0 : i32
    %c0_i32_0 = arith.constant 0 : i32
    %c0_i32_1 = arith.constant 0 : i32
    %c0_i32_2 = arith.constant 0 : i32
    %c0_i32_3 = arith.constant 0 : i32
    return %c0_i32, %c0_i32_0, %c0_i32_1, %c0_i32_2 : i32, i32, i32, i32
  }
  func.func @transform_7(%arg0: i32) -> (i32, i32, i32, i32) {
    %c0_i32 = arith.constant 0 : i32
    %c0_i32_0 = arith.constant 0 : i32
    %c0_i32_1 = arith.constant 0 : i32
    %c0_i32_2 = arith.constant 0 : i32
    %c0_i32_3 = arith.constant 0 : i32
    return %c0_i32, %c0_i32_0, %c0_i32_1, %c0_i32_2 : i32, i32, i32, i32
  }
  func.func @transform_8(%arg0: i32) -> (i32, i32, i32, i32) {
    %c0_i32 = arith.constant 0 : i32
    %c0_i32_0 = arith.constant 0 : i32
    %c0_i32_1 = arith.constant 0 : i32
    %c0_i32_2 = arith.constant 0 : i32
    %c0_i32_3 = arith.constant 0 : i32
    return %c0_i32, %c0_i32_0, %c0_i32_1, %c0_i32_2 : i32, i32, i32, i32
  }
  func.func @transform_9(%arg0: i32) -> (i32, i32, i32) {
    %c0_i32 = arith.constant 0 : i32
    %c0_i32_0 = arith.constant 0 : i32
    %c0_i32_1 = arith.constant 0 : i32
    %c0_i32_2 = arith.constant 0 : i32
    return %c0_i32, %c0_i32_0, %c0_i32_1 : i32, i32, i32
  }
  func.func @transform_10(%arg0: i32) -> (i32, i32, i32) {
    %c0_i32 = arith.constant 0 : i32
    %c0_i32_0 = arith.constant 0 : i32
    %c0_i32_1 = arith.constant 0 : i32
    %c0_i32_2 = arith.constant 0 : i32
    return %c0_i32, %c0_i32_0, %c0_i32_1 : i32, i32, i32
  }
  func.func @transform_11(%arg0: i32) -> (i32, i32, i32) {
    %c0_i32 = arith.constant 0 : i32
    %c0_i32_0 = arith.constant 0 : i32
    %c0_i32_1 = arith.constant 0 : i32
    %c0_i32_2 = arith.constant 0 : i32
    return %c0_i32, %c0_i32_0, %c0_i32_1 : i32, i32, i32
  }
  func.func @transform_12(%arg0: i32) -> (i32, i32, i32) {
    %c0_i32 = arith.constant 0 : i32
    %c0_i32_0 = arith.constant 0 : i32
    %c0_i32_1 = arith.constant 0 : i32
    %c0_i32_2 = arith.constant 0 : i32
    return %c0_i32, %c0_i32_0, %c0_i32_1 : i32, i32, i32
  }
  func.func @transform_13(%arg0: i32) -> (i32, i32, i32) {
    %c0_i32 = arith.constant 0 : i32
    %c0_i32_0 = arith.constant 0 : i32
    %c0_i32_1 = arith.constant 0 : i32
    %c0_i32_2 = arith.constant 0 : i32
    return %c0_i32, %c0_i32_0, %c0_i32_1 : i32, i32, i32
  }
  func.func @transform_14(%arg0: i32) -> (i32, i32, i32) {
    %c0_i32 = arith.constant 0 : i32
    %c0_i32_0 = arith.constant 0 : i32
    %c0_i32_1 = arith.constant 0 : i32
    %c0_i32_2 = arith.constant 0 : i32
    return %c0_i32, %c0_i32_0, %c0_i32_1 : i32, i32, i32
  }
  func.func @transform_15(%arg0: i32) -> (i32, i32, i32) {
    %c0_i32 = arith.constant 0 : i32
    %c0_i32_0 = arith.constant 0 : i32
    %c0_i32_1 = arith.constant 0 : i32
    %c0_i32_2 = arith.constant 0 : i32
    return %c0_i32, %c0_i32_0, %c0_i32_1 : i32, i32, i32
  }
  func.func @transform_16(%arg0: i32) -> (i32, i32) {
    %c0_i32 = arith.constant 0 : i32
    %c0_i32_0 = arith.constant 0 : i32
    %c0_i32_1 = arith.constant 0 : i32
    return %c0_i32, %c0_i32_0 : i32, i32
  }
  func.func @transform_17(%arg0: i32) -> (i32, i32) {
    %c0_i32 = arith.constant 0 : i32
    %c0_i32_0 = arith.constant 0 : i32
    %c0_i32_1 = arith.constant 0 : i32
    return %c0_i32, %c0_i32_0 : i32, i32
  }
  func.func @transform_18(%arg0: i32) -> (i32, i32, i32) {
    %c0_i32 = arith.constant 0 : i32
    %c0_i32_0 = arith.constant 0 : i32
    %c0_i32_1 = arith.constant 0 : i32
    return %arg0, %c0_i32, %c0_i32_0 : i32, i32, i32
  }
}

</mosaic_0001>

<bundles_post_ra>
// kernel: vit_forward.1
= control target key start
LH: loop header
LB: loop body
LE: loop exit
PB: predicated region body
PF: predicated region fallthrough
CT: control target
= control target key end

     0   :  { %s7350_s0 = inlined_call_operand.vmem [shape: f32[2,5,192], index: 0, kind: input, shape index: {}]   ;;  %s7351_s1 = inlined_call_operand.vmem [shape: f32[5,32], index: 1, kind: input, shape index: {}]   ;;  %s7352_s2 = inlined_call_operand.vmem [shape: f32[192,32], index: 2, kind: input, shape index: {}]   ;;  %s7353_s3 = inlined_call_operand.vmem [shape: f32[2,1,32], index: 3, kind: input, shape index: {}]   ;;  %s7354_s4 = inlined_call_operand.vmem [shape: f32[2,1,32], index: 4, kind: input, shape index: {}]   ;;  %s7355_s5 = inlined_call_operand.vmem [shape: f32[2,4,32,8], index: 5, kind: input, shape index: {}]   ;;  %s7356_s6 = inlined_call_operand.vmem [shape: f32[2,4,32,8], index: 6, kind: input, shape index: {}]   ;;  %s7357_s7 = inlined_call_operand.vmem [shape: f32[2,4,32,8], index: 7, kind: input, shape index: {}]   ;;  %s7358_s8 = inlined_call_operand.vmem [shape: f32[2,4,8,32], index: 8, kind: input, shape index: {}]   ;;  %s7359_s9 = inlined_call_operand.vmem [shape: f32[2,1,32], index: 9, kind: input, shape index: {}]   ;;  %s7360_s10 = inlined_call_operand.vmem [shape: f32[2,1,32], index: 10, kind: input, shape index: {}]   ;;  %s7361_s11 = inlined_call_operand.vmem [shape: f32[2,1,32], index: 11, kind: input, shape index: {}]   ;;  %s7362_s12 = inlined_call_operand.vmem [shape: f32[2,32,128], index: 12, kind: input, shape index: {}]   ;;  %s7363_s13 = inlined_call_operand.vmem [shape: f32[2,1,128], index: 13, kind: input, shape index: {}]   ;;  %s7364_s14 = inlined_call_operand.vmem [shape: f32[2,128,32], index: 14, kind: input, shape index: {}]   ;;  %s7365_s15 = inlined_call_operand.vmem [shape: f32[2,1,32], index: 15, kind: input, shape index: {}]   ;;  %s7366_s16 = inlined_call_operand.vmem [shape: f32[1,32], index: 16, kind: input, shape index: {}]   ;;  %s7367_s17 = inlined_call_operand.vmem [shape: f32[1,32], index: 17, kind: input, shape index: {}]   ;;  %s7368_s18 = inlined_call_operand.hbm [shape: f32[2,1,32], index: 18, kind: output, shape index: {}]  }
   0x1   :  { %7377 = sst [smem:[#allocation11_spill]] %s7350_s0 }
   0x2   :  { %7378 = sst [smem:[#allocation12_spill]] %s7351_s1 }
   0x3   :  { %7379 = sst [smem:[#allocation13_spill]] %s7352_s2 }
   0x4   :  { %7380 = sst [smem:[#allocation14_spill]] %s7368_s18 }
   0x5   :  { %23 = vsyncpa [#allocation3], 0 }
   0x6   :  { %25 = vsyncpa [#allocation3 + $0x1], 0  ;;  %s6322_s27 = smov 0   ;;  %s6324_s28 = smov 0  }
   0x7   :  { %s6326_s29 = smov 0   ;;  %s6328_s30 = smov 0  }
   0x8 LB: > { %7381 = sst [smem:[#allocation5_spill]] %s6209_s27  ;;  %s6343_s0 = sadd.s32 4294967295, %s6221_s30   ;;  %s6221_s30 = sphi %s6328_s30, %s7396_s30   ;;  %s6217_s29 = sphi %s6326_s29, %s7398_s29   ;;  %s6213_s28 = sphi %s6324_s28, %s7400_s28   ;;  %s6209_s27 = sphi %s6322_s27, %s7399_s27  }
   0x9   : > { %7382 = sst [smem:[#allocation6_spill]] %s6217_s29  ;;  %s4973_s19 = sadd.s32 4294967294, %s6221_s30  }
   0xa   : > { %7383 = sst [smem:[#allocation7_spill]] %s6221_s30  ;;  %s6347_s1 = sadd.s32 1, %s6221_s30  }
   0xb   : > { %7384 = sst [smem:[#allocation8_spill]] %s6347_s1  ;;  %s421_s20 = sadd.s32 1, %s6217_s29 }
   0xc   : > { %s418_s21 = ssub.s32 %s6221_s30, %s6347_s1  ;;  %p431_p0 = scmp.ne.s32.totalorder %s6217_s29, %s6213_s28 }
   0xd   : > { %p419_p1 = scmp.eq.s32.totalorder %s418_s21, 0  ;;  %p432_p2 = scmp.eq.s32.totalorder %s6343_s0, 1 }
   0xe   : > { %p437_p3 = scmp.ne.s32.totalorder %s6213_s28, %s6209_s27  ;;  %p438_p4 = scmp.eq.s32.totalorder %s4973_s19, 1 }
   0xf   : > { %s6358_s22 = scalar_select %p419_p1, %s6217_s29, %s421_s20  }
  0x10   : > { %p6360_p5 = por %p432_p2, %p431_p0  ;;  %p6364_p6 = por %p438_p4, %p437_p3 }
  0x11   : > { %7385 = sst [smem:[#allocation9_spill]] %s6358_s22  ;;  %p4976_p7 = scmp.ge.s32.totalorder %s6221_s30, 1 }
  0x12   : > { %s7387_s23 = scalar_select %p6364_p6, 1, 0 }
  0x13   : > { %p515_p8 = scmp.lt.s32.totalorder %s6221_s30, 3 }
  0x14   : > { %7388 = sst [smem:[#allocation10_spill]] %s7387_s23 }
  0x15   : > { %p516_p9 = pnand %p4976_p7, %p515_p8 }
  0x16   : > { %s7389_s26 = sld [smem:[#allocation13_spill]] (!%p516_p9)  ;;  %p568_p10 = scmp.lt.s32.totalorder (!%p516_p9), %s6343_s0, 1  ;;  %v6223_v3 = vmov (!%p516_p9), 0.0|0.0   ;;  %vm600_vm0 = vcmask (!%p516_p9), 523264   ;;  %vm676_vm1 = vcmask (!%p516_p9), 258048   ;;  %v705_v49 = vld [vmem:[%s7355_s5] sm:$0xff] (!%p516_p9) }
  0x17   : > { %519 = sbr.rel (%p516_p9) target bundleno = 5189 (0x1445), region = 92  ;;  %5831 = vmatprep.subr.bf16.mxu0 (!%p516_p9), %v6223_v3  ;;  %5873 = vmatprep.subr.bf16.mxu1 (!%p516_p9), %v6223_v3  ;;  %s7390_s29 = sld [smem:[#allocation11_spill]] (!%p516_p9)  ;;  %v706_v50 = vld [vmem:[%s7355_s5 + $0x8] sm:$0xff] (!%p516_p9)  ;;  %v709_v51 = vld [vmem:[%s7355_s5 + $0x20] sm:$0xff] (!%p516_p9)  ;;  %v707_v55 = vld [vmem:[%s7355_s5 + $0x10] sm:$0xff] (!%p516_p9)  ;;  %vm6224_vm2 = vmmov (!%p516_p9), 0  }
  0x18   : > { %s7391_s23 = sld [smem:[#allocation12_spill]] (!%p516_p9)  ;;  %v5868_v52 = vpack.c.bf16 (!%p516_p9), %v706_v50, %v705_v49  ;;  %v710_v53 = vld [vmem:[%s7355_s5 + $0x28] sm:$0xff] (!%p516_p9)  ;;  %v708_v56 = vld [vmem:[%s7355_s5 + $0x18] sm:$0xff] (!%p516_p9)  ;;  %v711_v57 = vld [vmem:[%s7355_s5 + $0x30] sm:$0xff] (!%p516_p9)  ;;  %v6225_v61 = vmov (!%p516_p9), 0.0   ;;  %vm721_vm3 = vcmask (!%p516_p9), 261120  }
  0x19   : > { %v5874_v54 = vpack.c.bf16 (!%p516_p9), %v710_v53, %v709_v51  ;;  %v5871_v58 = vpack.c.bf16 (!%p516_p9), %v708_v56, %v707_v55  ;;  %v712_v59 = vld [vmem:[%s7355_s5 + $0x38] sm:$0xff] (!%p516_p9)  ;;  %5374 = vmatprep.mubr.msk.f32.mxu1 (!%p516_p9), %vm6224_vm2, %v6225_v61  ;;  %v1017_v51 = vld [vmem:[%s7356_s6 + $0x60] sm:$0xff] (!%p516_p9)  ;;  %vm1597_vm4 = vcmask (!%p516_p9), 64512   ;;  %vm1951_vm5 = vcmask (!%p516_p9), 1044480   ;;  %s566_s30 = sand.u32 (!%p516_p9), 1, %s6213_s28   ;;  %s5139_s19 = sshll.u32 (!%p516_p9), %s6343_s0, 4 }
  0x1a   : > { %v5877_v60 = vpack.c.bf16 (!%p516_p9), %v712_v59, %v711_v57  ;;  %v1012_v49 = vld [vmem:[%s7356_s6 + $0x38] sm:$0xff] (!%p516_p9)  ;;  %v1305_v57 = vld [vmem:[%s7357_s7 + $0x20] sm:$0xff] (!%p516_p9)  ;;  %vm1902_vm6 = vcmask (!%p516_p9), 36864   ;;  %vm1947_vm7 = vcmask (!%p516_p9), 39936   ;;  %vm4888_vm8 = vcmask (!%p516_p9), 253952   ;;  %s567_s27 = scalar_lea.vmem (!%p516_p9), [#allocation2], %s566_s30 }
  0x1b   : > { %5875 = vmatpush3.bf16.msra.mxu1 (!%p516_p9), %v5874_v54  ;;  %v1019_v54 = vld [vmem:[%s7356_s6 + $0x70] sm:$0xff] (!%p516_p9)  ;;  %v1020_v55 = vld [vmem:[%s7356_s6 + $0x78] sm:$0xff] (!%p516_p9)  ;;  %s7392_s22 = sld [smem:[#allocation14_spill]] (!%p516_p9)  ;;  %s4906_s20 = scalar_lea.sflag (!%p516_p9), [#allocation3], %s566_s30 }
  0x1c   : > { %v575_v0 = vld [vmem:[%s7389_s26] sm:$0xff] (!%p516_p9)  ;;  %v576_v1 = vld [vmem:[%s7389_s26 + $0x8] sm:$0xff] (!%p516_p9)  ;;  %v577_v2 = vld [vmem:[%s7389_s26 + $0x10] sm:$0xff] (!%p516_p9)  ;;  %5876 = vmatprep.subr.bf16.mxu1 (!%p516_p9), %v6223_v3  ;;  %v5913_v56 = vpack.c.bf16 (!%p516_p9), %v1020_v55, %v1019_v54 }
  0x1d   : > { %v5832_v4 = vpack.c.bf16 (!%p516_p9), %v576_v1, %v575_v0  ;;  %v578_v5 = vld [vmem:[%s7389_s26 + $0x18] sm:$0xff] (!%p516_p9)  ;;  %v579_v7 = vld [vmem:[%s7389_s26 + $0x20] sm:$0xff] (!%p516_p9)  ;;  %v580_v8 = vld [vmem:[%s7389_s26 + $0x28] sm:$0xff] (!%p516_p9) }
  0x1e   : > { %s569_s24 = scalar_select %p568_p10, %s6343_s0, 1  ;;  %v5835_v6 = vpack.c.bf16 %v578_v5, %v577_v2  ;;  %v5838_v9 = vpack.c.bf16 %v580_v8, %v579_v7  ;;  %v581_v10 = vld [vmem:[%s7389_s26 + $0x30] sm:$0xff]  ;;  %v582_v11 = vld [vmem:[%s7389_s26 + $0x38] sm:$0xff]  ;;  %v583_v14 = vld [vmem:[%s7389_s26 + $0x40] sm:$0xff] }
  0x1f   : > { %5833 = vmatpush1.bf16.msra.mxu0 %v5832_v4  ;;  %v5841_v13 = vpack.c.bf16 %v582_v11, %v581_v10  ;;  %v584_v15 = vld [vmem:[%s7389_s26 + $0x48] sm:$0xff]  ;;  %v585_v17 = vld [vmem:[%s7389_s26 + $0x50] sm:$0xff]  ;;  %v586_v18 = vld [vmem:[%s7389_s26 + $0x58] sm:$0xff]  ;;  %5878 = vmatpush3.bf16.msra.mxu1 %v5877_v60  ;;  %s6226_s0 = smov [#allocation2]  }
  0x20   : > { %5834 = vmatprep.subr.bf16.mxu0 %v6223_v3  ;;  %s5142_s21 = sshll.u32 %s569_s24, 4  ;;  %v5844_v16 = vpack.c.bf16 %v584_v15, %v583_v14  ;;  %v5847_v19 = vpack.c.bf16 %v586_v18, %v585_v17  ;;  %v587_v20 = vld [vmem:[%s7389_s26 + $0x60] sm:$0xff]  ;;  %v588_v21 = vld [vmem:[%s7389_s26 + $0x68] sm:$0xff]  ;;  %v589_v23 = vld [vmem:[%s7389_s26 + $0x70] sm:$0xff]  ;;  %5879 = vmatprep.subr.bf16.mxu1 %v6223_v3 }
  0x21   : > { %s6396_s1 = scalar_lea.vmem %s7390_s29, %s5142_s21  ;;  %v5850_v22 = vpack.c.bf16 %v588_v21, %v587_v20  ;;  %v590_v24 = vld [vmem:[%s7389_s26 + $0x78] sm:$0xff]  ;;  %v591_v26 = vld [vmem:[%s7389_s26 + $0x80] sm:$0xff]  ;;  %v592_v27 = vld [vmem:[%s7389_s26 + $0x88] sm:$0xff]  ;;  %s7307_s18 = scalar_lea.hbm %s7392_s22, %s5139_s19 }
  0x22   : > { %v574_v12 = vld [vmem:[%s6396_s1 + $0x8] sm:$0x1f]  ;;  %v5853_v25 = vpack.c.bf16 %v590_v24, %v589_v23  ;;  %v5856_v28 = vpack.c.bf16 %v592_v27, %v591_v26  ;;  %v593_v29 = vld [vmem:[%s7389_s26 + $0x90] sm:$0xff]  ;;  %v594_v30 = vld [vmem:[%s7389_s26 + $0x98] sm:$0xff]  ;;  %s6163_s29 = sshll.u32 %s6226_s0, 4  ;;  %s6164_s29 = int_to_ptr.vmem [resolvable:$false] %s6163_s29 }
  0x23   : > { %5836 = vmatpush1.bf16.msra.mxu0 %v5835_v6  ;;  %4979 = vmatprep.mubr.msk.f32.mxu0 %vm600_vm0, %v574_v12  ;;  %v5859_v31 = vpack.c.bf16 %v594_v30, %v593_v29  ;;  %v595_v32 = vld [vmem:[%s7389_s26 + $0xa0] sm:$0xff]  ;;  %v596_v33 = vld [vmem:[%s7389_s26 + $0xa8] sm:$0xff]  ;;  %v597_v35 = vld [vmem:[%s7389_s26 + $0xb0] sm:$0xff]  ;;  %s6165_s25 = scalar_lea.vmem %s6164_s29, 32 }
  0x24   : > { %5837 = vmatprep.subr.bf16.mxu0 %v6223_v3  ;;  %v5862_v34 = vpack.c.bf16 %v596_v33, %v595_v32  ;;  %v598_v36 = vld [vmem:[%s7389_s26 + $0xb8] sm:$0xff]  ;;  %v573_v38 = vld [vmem:[%s6396_s1] sm:$0x1f]  ;;  %v714_v6 = vld [vmem:[%s7355_s5 + $0x48] sm:$0xff] }
  0x25   : > { %v5865_v37 = vpack.c.bf16 %v598_v36, %v597_v35  ;;  %v599_v39 = vld [vmem:[%s7391_s23] sm:$0x1f]  ;;  %v1014_v8 = vld [vmem:[%s7356_s6 + $0x48] sm:$0xff]  ;;  %v716_v15 = vld [vmem:[%s7355_s5 + $0x58] sm:$0xff]  ;;  %s4918_s23 = sshll.u32 %s567_s27, 4  ;;  %s7309_s23 = int_to_ptr.vmem [resolvable:$true] %s4918_s23 }
  0x26   : > { %v4980_v2 = vld [vmem:[%s7353_s3] ss:$0 sm:$0xff]  ;;  %v1016_v17 = vld [vmem:[%s7356_s6 + $0x58] sm:$0xff]  ;;  %v718_v21 = vld [vmem:[%s7355_s5 + $0x68] sm:$0xff]  ;;  %s6159_s21 = scalar_lea.vmem %s7309_s23, 16  ;;  %p6166_p0 = scmp.lt.s32.totalorder %s7309_s23, %s6164_s29 }
  0x27   : > { %5839 = vmatpush1.bf16.msra.mxu0 %v5838_v9  ;;  %v713_v4 = vld [vmem:[%s7355_s5 + $0x40] sm:$0xff]  ;;  %v1302_v23 = vld [vmem:[%s7357_s7 + $0x8] sm:$0xff]  ;;  %v719_v26 = vld [vmem:[%s7355_s5 + $0x70] sm:$0xff]  ;;  %p6160_p11 = scmp.ne.s32.totalorder %s7309_s23, %s6159_s21  ;;  %p6167_p1 = scmp.lt.s32.totalorder %s6165_s25, %s6159_s21 }
  0x28   : > { %5840 = vmatprep.subr.bf16.mxu0 %v6223_v3  ;;  %v1013_v7 = vld [vmem:[%s7356_s6 + $0x40] sm:$0xff]  ;;  %v5880_v11 = vpack.c.bf16 %v714_v6, %v713_v4  ;;  %v720_v27 = vld [vmem:[%s7355_s5 + $0x78] sm:$0xff]  ;;  %v1006_v33 = vld [vmem:[%s7356_s6 + $0x8] sm:$0xff] }
  0x29   : > { %v4981_v9 = vld [vmem:[%s7354_s4] ss:$0 sm:$0xff]  ;;  %v5904_v12 = vpack.c.bf16 %v1014_v8, %v1013_v7  ;;  %v1304_v29 = vld [vmem:[%s7357_s7 + $0x18] sm:$0xff]  ;;  %v5889_v30 = vpack.c.bf16 %v720_v27, %v719_v26  ;;  %v1310_v35 = vld [vmem:[%s7357_s7 + $0x48] sm:$0xff]  ;;  %p6161_p12 = pnand %p6160_p11, %p6360_p5  ;;  %p6168_p2 = por %p6167_p1, %p6166_p0 }
  0x2a   : > { %v717_v20 = vld [vmem:[%s7355_s5 + $0x60] sm:$0xff]  ;;  %v1307_v60 = vld [vmem:[%s7357_s7 + $0x30] sm:$0xff] }
  0x2b   : > { %5842 = vmatpush1.bf16.msra.mxu0 %v5841_v13  ;;  %v715_v13 = vld [vmem:[%s7355_s5 + $0x50] sm:$0xff]  ;;  %v5886_v24 = vpack.c.bf16 %v718_v21, %v717_v20  ;;  %v1005_v32 = vld [vmem:[%s7356_s6] sm:$0xff]  ;;  %p6162_p13 = pneg %p6161_p12 }
  0x2c   : > { %5843 = vmatprep.subr.bf16.mxu0 %v6223_v3  ;;  %v5883_v18 = vpack.c.bf16 %v716_v15, %v715_v13  ;;  %v5892_v36 = vpack.c.bf16 %v1006_v33, %v1005_v32  ;;  %v1315_v4 = vld [vmem:[%s7357_s7 + $0x70] sm:$0xff] }
  0x2d   : > { %p6169_p3 = pnand %p6168_p2, %p6162_p13 }
  0x2f   : > { %5845 = vmatpush1.bf16.msra.mxu0 %v5844_v16  ;;  %v1015_v16 = vld [vmem:[%s7356_s6 + $0x50] sm:$0xff] }
  0x30   : > { %5846 = vmatprep.subr.bf16.mxu0 %v6223_v3 }
  0x33   : > { %5848 = vmatpush1.bf16.msra.mxu0 %v5847_v19  ;;  %v5907_v19 = vpack.c.bf16 %v1016_v17, %v1015_v16 }
  0x34   : > { %5849 = vmatprep.subr.bf16.mxu0 %v6223_v3 }
  0x37   : > { %5851 = vmatpush1.bf16.msra.mxu0 %v5850_v22  ;;  %v1301_v22 = vld [vmem:[%s7357_s7] sm:$0xff] }
  0x38   : > { %5852 = vmatprep.subr.bf16.mxu0 %v6223_v3 }
  0x3b   : > { %5854 = vmatpush1.bf16.msra.mxu0 %v5853_v25  ;;  %v5916_v25 = vpack.c.bf16 %v1302_v23, %v1301_v22 }
  0x3c   : > { %5855 = vmatprep.subr.bf16.mxu0 %v6223_v3 }
  0x3f   : > { %5857 = vmatpush1.bf16.msra.mxu0 %v5856_v28  ;;  %v1303_v28 = vld [vmem:[%s7357_s7 + $0x10] sm:$0xff] }
  0x40   : > { %5858 = vmatprep.subr.bf16.mxu0 %v6223_v3 }
  0x43   : > { %5860 = vmatpush1.bf16.msra.mxu0 %v5859_v31  ;;  %v5919_v31 = vpack.c.bf16 %v1304_v29, %v1303_v28 }
  0x44   : > { %5861 = vmatprep.subr.bf16.mxu0 %v6223_v3 }
  0x47   : > { %5863 = vmatpush1.bf16.msra.mxu0 %v5862_v34  ;;  %v1309_v34 = vld [vmem:[%s7357_s7 + $0x40] sm:$0xff] }
  0x48   : > { %5864 = vmatprep.subr.bf16.mxu0 %v6223_v3 }
  0x4b   : > { %5866 = vmatpush1.bf16.msra.mxu0 %v5865_v37  ;;  %v5928_v37 = vpack.c.bf16 %v1310_v35, %v1309_v34 }
  0x4c   : > { %5867 = vmatprep.subr.bf16.mxu0 %v6223_v3 }
  0x4e   : > { %669 = vmatmul.mubr.f32.vlgmr.msra.gmra.mrb[0].mxu0 %v573_v38  ;;  %v1007_v38 = vld [vmem:[%s7356_s6 + $0x10] sm:$0xff] }
  0x4f   : > { %5869 = vmatpush3.bf16.msra.mxu0 %v5868_v52  ;;  %5363 = vmatprep.mubr.msk.f32.mxu0 %vm6224_vm2, %v6225_v61  ;;  %v1018_v52 = vld [vmem:[%s7356_s6 + $0x68] sm:$0xff] }
  0x50   : > { %5870 = vmatprep.subr.bf16.mxu0 %v6223_v3  ;;  %v5910_v53 = vpack.c.bf16 %v1018_v52, %v1017_v51 }
  0x53   : > { %5872 = vmatpush3.bf16.msra.mxu0 %v5871_v58  ;;  %v1306_v58 = vld [vmem:[%s7357_s7 + $0x28] sm:$0xff] }
  0x54   : > { %5903 = vmatprep.subr.bf16.mxu0 %v6223_v3  ;;  %v5922_v59 = vpack.c.bf16 %v1306_v58, %v1305_v57 }
 0x121   : > { %v670_v40 = vpop.f32.mrb[0].mxu0 }
 0x122   : > { %v6468_v41 = vadd.f32 %v670_v40, %v599_v39  ;;  %v672_v42 = vpop.f32.mrb[1].mxu0  ;;  %v1008_v39 = vld [vmem:[%s7356_s6 + $0x18] sm:$0xff]  ;;  %v1311_v40 = vld [vmem:[%s7357_s7 + $0x50] sm:$0xff] }
 0x123   : > { %v1312_v42 = vld [vmem:[%s7357_s7 + $0x58] sm:$0xff] }
 0x124   : > { %v677_v43 = vsel %vm676_vm1, %v6468_v41, 0.0 }
 0x125   : > { %678 = vadd.xlane.f32.xlu0 %v677_v43  ;;  %v5895_v43 = vpack.c.bf16 %v1008_v39, %v1007_v38 }
 0x1b2   : > { %v679_v44 = vpop.xlane.xlu0 %678 }
 0x1b3   : > { %v681_v45 = vmul.f32 0.03125, %v679_v44  ;;  %v5931_v44 = vpack.c.bf16 %v1312_v42, %v1311_v40 }
 0x1b5   : > { %v682_v46 = vsub.f32 %v6468_v41, %v681_v45  ;;  %v1009_v45 = vld [vmem:[%s7356_s6 + $0x20] sm:$0xff] }
 0x1b7   : > { %v683_v47 = vmul.f32 %v682_v46, %v682_v46 }
 0x1b9   : > { %v684_v48 = vsel %vm676_vm1, %v683_v47, 0.0 }
 0x1ba   : > { %685 = vadd.xlane.f32.xlu0 %v684_v48  ;;  %v1011_v48 = vld [vmem:[%s7356_s6 + $0x30] sm:$0xff] }
 0x1bb   : > { %v5901_v50 = vpack.c.bf16 %v1012_v49, %v1011_v48 }
 0x247   : > { %v686_v62 = vpop.xlane.xlu0 %685 }
 0x248   : > { %v687_v63 = vmul.f32 0.03125, %v686_v62  ;;  %v1308_v62 = vld [vmem:[%s7357_s7 + $0x38] sm:$0xff] }
 0x24a   : > { %v688_v0 = vadd.f32 1e-05, %v687_v63  ;;  %v5925_v63 = vpack.c.bf16 %v1308_v62, %v1307_v60 }
 0x24c   : > { %6113 = vrsqrt.f32 %v688_v0  ;;  %v1313_v0 = vld [vmem:[%s7357_s7 + $0x60] sm:$0xff] }
 0x256   : > { %v6114_v1 = vpop.eup %6113 }
 0x257   : > { %v690_v5 = vmul.f32 %v6114_v1, %v682_v46  ;;  %v1010_v46 = vld [vmem:[%s7356_s6 + $0x28] sm:$0xff] }
 0x258   : > { %v5898_v47 = vpack.c.bf16 %v1010_v46, %v1009_v45  ;;  %v1314_v1 = vld [vmem:[%s7357_s7 + $0x68] sm:$0xff] }
 0x259   : > { %v697_v10 = vmul.f32 %v4980_v2, %v690_v5  ;;  %v5934_v2 = vpack.c.bf16 %v1314_v1, %v1313_v0  ;;  %v1316_v5 = vld [vmem:[%s7357_s7 + $0x78] sm:$0xff] }
 0x25a   : > { %v5937_v6 = vpack.c.bf16 %v1316_v5, %v1315_v4 }
 0x25b   : > { %v6527_v14 = vadd.f32 %v4981_v9, %v697_v10 }
 0x25d   : > { %5364 = vmatmul.mubr.msk.f32.vlgmr.msra.gmra.mrb[2].mxu0 %vm721_vm3, %v6527_v14  ;;  %5375 = vmatmul.mubr.msk.f32.vlgmr.msra.gmra.mrb[0].mxu1 %vm721_vm3, %v6527_v14 }
 0x25e   : > { %5881 = vmatpush3.bf16.msra.mxu1 %v5880_v11  ;;  %5905 = vmatpush3.bf16.msra.mxu0 %v5904_v12 }
 0x25f   : > { %5882 = vmatprep.subr.bf16.mxu1 %v6223_v3  ;;  %5906 = vmatprep.subr.bf16.mxu0 %v6223_v3 }
 0x260   : > { %5385 = vmatprep.mubr.msk.f32.mxu1 %vm6224_vm2, %v6225_v61  ;;  %5429 = vmatprep.mubr.msk.f32.mxu0 %vm6224_vm2, %v6225_v61 }
 0x262   : > { %5884 = vmatpush3.bf16.msra.mxu1 %v5883_v18  ;;  %5908 = vmatpush3.bf16.msra.mxu0 %v5907_v19 }
 0x263   : > { %5885 = vmatprep.subr.bf16.mxu1 %v6223_v3  ;;  %5915 = vmatprep.subr.bf16.mxu0 %v6223_v3 }
 0x265   : > { %5386 = vmatmul.mubr.msk.f32.vlgmr.msra.gmra.mrb[2].mxu1 %vm721_vm3, %v6527_v14  ;;  %5430 = vmatmul.mubr.msk.f32.vlgmr.msra.gmra.mrb[4].mxu0 %vm721_vm3, %v6527_v14 }
 0x266   : > { %5887 = vmatpush3.bf16.msra.mxu1 %v5886_v24  ;;  %5917 = vmatpush3.bf16.msra.mxu0 %v5916_v25 }
 0x267   : > { %5888 = vmatprep.subr.bf16.mxu1 %v6223_v3  ;;  %5918 = vmatprep.subr.bf16.mxu0 %v6223_v3 }
 0x268   : > { %5396 = vmatprep.mubr.msk.f32.mxu1 %vm6224_vm2, %v6225_v61  ;;  %5451 = vmatprep.mubr.msk.f32.mxu0 %vm6224_vm2, %v6225_v61 }
 0x26a   : > { %5890 = vmatpush3.bf16.msra.mxu1 %v5889_v30  ;;  %5920 = vmatpush3.bf16.msra.mxu0 %v5919_v31 }
 0x26b   : > { %5891 = vmatprep.subr.bf16.mxu1 %v6223_v3  ;;  %5927 = vmatprep.subr.bf16.mxu0 %v6223_v3 }
 0x26d   : > { %5397 = vmatmul.mubr.msk.f32.vlgmr.msra.gmra.mrb[4].mxu1 %vm721_vm3, %v6527_v14  ;;  %5452 = vmatmul.mubr.msk.f32.vlgmr.msra.gmra.mrb[6].mxu0 %vm721_vm3, %v6527_v14 }
 0x26e   : > { %5893 = vmatpush3.bf16.msra.mxu1 %v5892_v36  ;;  %5929 = vmatpush3.bf16.msra.mxu0 %v5928_v37 }
 0x26f   : > { %5894 = vmatprep.subr.bf16.mxu1 %v6223_v3  ;;  %5930 = vmatprep.subr.bf16.mxu0 %v6223_v3 }
 0x270   : > { %5407 = vmatprep.mubr.msk.f32.mxu1 %vm6224_vm2, %v6225_v61  ;;  %5473 = vmatprep.mubr.msk.f32.mxu0 %vm6224_vm2, %v6225_v61 }
 0x272   : > { %5896 = vmatpush3.bf16.msra.mxu1 %v5895_v43  ;;  %5932 = vmatpush3.bf16.msra.mxu0 %v5931_v44 }
 0x273   : > { %5897 = vmatprep.subr.bf16.mxu1 %v6223_v3  ;;  %5487 = vmatprep.subr.mxu0 %v6225_v61 }
 0x275   : > { %5408 = vmatmul.mubr.msk.f32.vlgmr.msra.gmra.mrb[6].mxu1 %vm721_vm3, %v6527_v14  ;;  %5474 = vmatmul.mubr.msk.f32.vlgmr.msra.gmra.mrb[8].mxu0 %vm721_vm3, %v6527_v14 }
 0x276   : > { %5899 = vmatpush3.bf16.msra.mxu1 %v5898_v47  ;;  %5418 = vmatprep.mubr.msk.f32.mxu1 %vm6224_vm2, %v6225_v61 }
 0x277   : > { %5900 = vmatprep.subr.bf16.mxu1 %v6223_v3  ;;  %5489 = vmatprep.mubr.msk.f32.mxu0 %vm6224_vm2, %v6225_v61 }
 0x27a   : > { %5902 = vmatpush3.bf16.msra.mxu1 %v5901_v50 }
 0x27b   : > { %5909 = vmatprep.subr.bf16.mxu1 %v6223_v3 }
 0x27d   : > { %5419 = vmatmul.mubr.msk.f32.vlgmr.msra.gmra.mrb[8].mxu1 %vm721_vm3, %v6527_v14 }
 0x27e   : > { %5911 = vmatpush3.bf16.msra.mxu1 %v5910_v53  ;;  %5440 = vmatprep.mubr.msk.f32.mxu1 %vm6224_vm2, %v6225_v61 }
 0x27f   : > { %5912 = vmatprep.subr.bf16.mxu1 %v6223_v3 }
 0x282   : > { %5914 = vmatpush3.bf16.msra.mxu1 %v5913_v56 }
 0x283   : > { %5921 = vmatprep.subr.bf16.mxu1 %v6223_v3 }
 0x285   : > { %5441 = vmatmul.mubr.msk.f32.vlgmr.msra.gmra.mrb[10].mxu1 %vm721_vm3, %v6527_v14 }
 0x286   : > { %5923 = vmatpush3.bf16.msra.mxu1 %v5922_v59  ;;  %5462 = vmatprep.mubr.msk.f32.mxu1 %vm6224_vm2, %v6225_v61 }
 0x287   : > { %5924 = vmatprep.subr.bf16.mxu1 %v6223_v3 }
 0x28a   : > { %5926 = vmatpush3.bf16.msra.mxu1 %v5925_v63 }
 0x28b   : > { %5933 = vmatprep.subr.bf16.mxu1 %v6223_v3 }
 0x28d   : > { %5463 = vmatmul.mubr.msk.f32.vlgmr.msra.gmra.mrb[12].mxu1 %vm721_vm3, %v6527_v14 }
 0x28e   : > { %5935 = vmatpush3.bf16.msra.mxu1 %v5934_v2  ;;  %5484 = vmatprep.mubr.msk.f32.mxu1 %vm6224_vm2, %v6225_v61 }
 0x28f   : > { %5936 = vmatprep.subr.bf16.mxu1 %v6223_v3 }
 0x292   : > { %5938 = vmatpush3.bf16.msra.mxu1 %v5937_v6 }
 0x293   : > { %5502 = vmatprep.subr.mxu1 %v6225_v61 }
 0x295   : > { %5485 = vmatmul.mubr.msk.f32.vlgmr.msra.gmra.mrb[14].mxu1 %vm721_vm3, %v6527_v14 }
 0x296   : > { %5504 = vmatprep.mubr.msk.f32.mxu1 %vm6224_vm2, %v6225_v61 }
 0x330   : > { %v791_v7 = vpop.f32.mrb[2].mxu0  ;;  %v861_v8 = vpop.f32.mrb[0].mxu1 }
 0x331   : > { %v5365_v9 = vpop.f32.mrb[3].mxu0  ;;  %v5376_v10 = vpop.f32.mrb[1].mxu1 }
 0x338   : > { %v931_v11 = vpop.f32.mrb[2].mxu1  ;;  %v1227_v12 = vpop.f32.mrb[4].mxu0 }
 0x339   : > { %v5387_v13 = vpop.f32.mrb[3].mxu1  ;;  %v5431_v15 = vpop.f32.mrb[5].mxu0 }
 0x33a   : > { %v2253_v15 = vld [vmem:[%s7358_s8] sm:$0xff] }
 0x340   : > { %v1001_v16 = vpop.f32.mrb[4].mxu1  ;;  %v1383_v17 = vpop.f32.mrb[6].mxu0 }
 0x341   : > { %v5398_v18 = vpop.f32.mrb[5].mxu1  ;;  %v5453_v19 = vpop.f32.mrb[7].mxu0 }
 0x348   : > { %v1087_v20 = vpop.f32.mrb[6].mxu1  ;;  %v6702_v21 = vpop.f32.mrb[8].mxu0 }
 0x349   : > { %v5409_v14 = vpop.f32.mrb[7].mxu1  ;;  %v5475_v22 = vpop.f32.mrb[9].mxu0  ;;  %5488 = vmatpush3.xpose.msk.msra.mxu0 %vm1597_vm4, %v1087_v20  ;;  %v2256_v20 = vld [vmem:[%s7358_s8 + $0x18] sm:$0xff] }
 0x34a   : > { %5492 = vmatprep.subr.mxu0 %v6225_v61 }
 0x34c   : > { %5490 = vmatmul.mubr.msk.f32.vlgmr.msra.gmra.mrb[10].mxu0 %vm1597_vm4, %v791_v7 }
 0x34d   : > { %5494 = vmatprep.mubr.msk.f32.mxu0 %vm6224_vm2, %v6225_v61 }
 0x350   : > { %v1157_v23 = vpop.f32.mrb[8].mxu1 }
 0x351   : > { %v5420_v24 = vpop.f32.mrb[9].mxu1  ;;  %5493 = vmatpush3.xpose.msk.msra.mxu0 %vm1597_vm4, %v1157_v23 }
 0x352   : > { %5497 = vmatprep.subr.mxu0 %v6225_v61 }
 0x354   : > { %5495 = vmatmul.mubr.msk.f32.vlgmr.msra.gmra.mrb[12].mxu0 %vm1597_vm4, %v861_v8 }
 0x355   : > { %5498 = vmatpush3.xpose.msk.msra.mxu0 %vm1597_vm4, %v1227_v12  ;;  %5499 = vmatprep.mubr.msk.f32.mxu0 %vm6224_vm2, %v6225_v61 }
 0x356   : > { %5507 = vmatprep.subr.mxu0 %v6225_v61 }
 0x358   : > { %v1297_v25 = vpop.f32.mrb[10].mxu1  ;;  %5500 = vmatmul.mubr.msk.f32.vlgmr.msra.gmra.mrb[14].mxu0 %vm1597_vm4, %v931_v11 }
 0x359   : > { %v5442_v26 = vpop.f32.mrb[11].mxu1  ;;  %5503 = vmatpush3.xpose.msk.msra.mxu1 %vm1597_vm4, %v1297_v25  ;;  %5508 = vmatpush3.msk.msra.mxu0 %vm1951_vm5, %v1383_v17  ;;  %v2255_v17 = vld [vmem:[%s7358_s8 + $0x10] sm:$0xff] }
 0x35a   : > { %5512 = vmatprep.subr.mxu1 %v6225_v61  ;;  %5509 = vmatprep.mubr.msk.f32.mxu0 %vm6224_vm2, %v6225_v61 }
 0x35b   : > { %5517 = vmatprep.subr.mxu0 %v6225_v61 }
 0x35c   : > { %5505 = vmatmul.mubr.msk.f32.vlgmr.msra.gmra.mrb[16].mxu1 %vm1597_vm4, %v1001_v16  ;;  %v2254_v16 = vld [vmem:[%s7358_s8 + $0x8] sm:$0xff] }
 0x35d   : > { %5514 = vmatprep.mubr.msk.f32.mxu1 %vm6224_vm2, %v6225_v61 }
 0x360   : > { %v1453_v27 = vpop.f32.mrb[12].mxu1 }
 0x361   : > { %v5464_v28 = vpop.f32.mrb[13].mxu1  ;;  %5513 = vmatpush3.msk.msra.mxu1 %vm1951_vm5, %v1453_v27 }
 0x362   : > { %5522 = vmatprep.subr.mxu1 %v6225_v61 }
 0x368   : > { %v6728_v29 = vpop.f32.mrb[14].mxu1 }
 0x369   : > { %v5486_v30 = vpop.f32.mrb[15].mxu1 }
 0x41f   : > { %v1670_v31 = vpop.f32.mrb[10].mxu0 }
 0x420   : > { %v5491_v32 = vpop.f32.mrb[11].mxu0  ;;  %v1903_v33 = vsel %vm1902_vm6, %v1670_v31, -inf }
 0x421   : > { %1904 = vmax.xlane.f32.xlu1 %v1903_v33 }
 0x427   : > { %v1746_v34 = vpop.f32.mrb[12].mxu0 }
 0x428   : > { %v5496_v35 = vpop.f32.mrb[13].mxu0  ;;  %v1906_v36 = vsel %vm1902_vm6, %v1746_v34, -inf }
 0x429   : > { %1907 = vmax.xlane.f32.xlu1 %v1906_v36 }
 0x42b   : > { %v1822_v37 = vpop.f32.mrb[14].mxu0 }
 0x42c   : > { %v5501_v38 = vpop.f32.mrb[15].mxu0  ;;  %v1909_v39 = vsel %vm1902_vm6, %v1822_v37, -inf }
 0x42d   : > { %1910 = vmax.xlane.f32.xlu0 %v1909_v39  ;;  %v5014_v39 = vld [vmem:[%s7359_s9] ss:$0 sm:$0xff] }
 0x42f   : > { %v1898_v40 = vpop.f32.mrb[16].mxu1 }
 0x430   : > { %v5506_v42 = vpop.f32.mrb[17].mxu1  ;;  %v1912_v43 = vsel %vm1902_vm6, %v1898_v40, -inf }
 0x431   : > { %1913 = vmax.xlane.f32.xlu1 %v1912_v43 }
 0x4ae   : > { %v1905_v44 = vpop.xlane.xlu1 %1904 }
 0x4af   : > { %v1915_v45 = vsub.f32 %v1670_v31, %v1905_v44 }
 0x4b1   : > { %v1919_v46 = vmul.f32 1.442695, %v1915_v45 }
 0x4b3   : > { %6115 = vpow2.f32 %v1919_v46 }
 0x4b6   : > { %v1908_v47 = vpop.xlane.xlu1 %1907 }
 0x4b7   : > { %v1916_v48 = vsub.f32 %v1746_v34, %v1908_v47 }
 0x4b9   : > { %v1921_v49 = vmul.f32 1.442695, %v1916_v48 }
 0x4ba   : > { %v1911_v50 = vpop.xlane.xlu0 %1910 }
 0x4bb   : > { %6117 = vpow2.f32 %v1921_v49  ;;  %v1917_v51 = vsub.f32 %v1822_v37, %v1911_v50 }
 0x4bd   : > { %v6116_v52 = vpop.eup %6115  ;;  %v1923_v53 = vmul.f32 1.442695, %v1917_v51  ;;  %v2594_v51 = vld [vmem:[%s7362_s12] sm:$0xff] }
 0x4be   : > { %v1914_v54 = vpop.xlane.xlu1 %1913  ;;  %v1927_v55 = vsel %vm1902_vm6, %v6116_v52, 0.0 }
 0x4bf   : > { %6119 = vpow2.f32 %v1923_v53  ;;  %v1918_v56 = vsub.f32 %v1898_v40, %v1914_v54  ;;  %1928 = vadd.xlane.f32.xlu0 %v1927_v55  ;;  %v2596_v53 = vld [vmem:[%s7362_s12 + $0x10] sm:$0xff]  ;;  %v2597_v54 = vld [vmem:[%s7362_s12 + $0x18] sm:$0xff] }
 0x4c0   : > { %v5943_v55 = vpack.c.bf16 %v2597_v54, %v2596_v53  ;;  %v5026_v53 = vld [vmem:[%s7355_s5 + $0x90] sm:$0xff]  ;;  %v5027_v54 = vld [vmem:[%s7355_s5 + $0x98] sm:$0xff] }
 0x4c1   : > { %v1925_v57 = vmul.f32 1.442695, %v1918_v56  ;;  %v2683_v56 = vld [vmem:[%s7364_s14] sm:$0xff] }
 0x4c3   : > { %6121 = vpow2.f32 %v1925_v57  ;;  %v2684_v57 = vld [vmem:[%s7364_s14 + $0x8] sm:$0xff] }
 0x4c5   : > { %v6118_v58 = vpop.eup %6117 }
 0x4c6   : > { %v1930_v59 = vsel %vm1902_vm6, %v6118_v58, 0.0 }
 0x4c7   : > { %1931 = vadd.xlane.f32.xlu1 %v1930_v59  ;;  %v5946_v59 = vpack.c.bf16 %v2684_v57, %v2683_v56  ;;  %v5973_v56 = vpack.c.bf16 %v5027_v54, %v5026_v53  ;;  %v5047_v57 = vld [vmem:[%s7356_s6 + $0x98] sm:$0xff] }
 0x4c8   : > { %v5059_v53 = vld [vmem:[%s7356_s6 + $0xf8] sm:$0xff] }
 0x4c9   : > { %v6120_v60 = vpop.eup %6119 }
 0x4ca   : > { %v1933_v62 = vsel %vm1902_vm6, %v6120_v60, 0.0 }
 0x4cb   : > { %1934 = vadd.xlane.f32.xlu0 %v1933_v62 }
 0x4cd   : > { %v6122_v63 = vpop.eup %6121 }
 0x4ce   : > { %v1936_v0 = vsel %vm1902_vm6, %v6122_v63, 0.0 }
 0x4cf   : > { %1937 = vadd.xlane.f32.xlu1 %v1936_v0  ;;  %v2688_v0 = vld [vmem:[%s7364_s14 + $0x28] sm:$0xff] }
 0x54c   : > { %v1929_v1 = vpop.xlane.xlu0 %1928 }
 0x54d   : > { %6123 = vrcp.f32 %v1929_v1 }
 0x554   : > { %v1932_v2 = vpop.xlane.xlu1 %1931 }
 0x555   : > { %6125 = vrcp.f32 %v1932_v2 }
 0x557   : > { %v6124_v4 = vpop.eup %6123 }
 0x558   : > { %v1943_v5 = vmul.f32 %v6124_v4, %v6116_v52  ;;  %v1935_v6 = vpop.xlane.xlu0 %1934 }
 0x559   : > { %6127 = vrcp.f32 %v1935_v6 }
 0x55a   : > { %5510 = vmatmul.mubr.msk.f32.vlgmr.msra.gmra.mrb[16].mxu0 %vm1947_vm7, %v1943_v5 }
 0x55b   : > { %5518 = vmatpush3.msk.msra.mxu0 %vm1951_vm5, %v6702_v21  ;;  %5519 = vmatprep.mubr.msk.f32.mxu0 %vm6224_vm2, %v6225_v61 }
 0x55c   : > { %v1938_v7 = vpop.xlane.xlu1 %1937  ;;  %5527 = vmatprep.subr.mxu0 %v6225_v61 }
 0x55d   : > { %6129 = vrcp.f32 %v1938_v7  ;;  %v5015_v7 = vld [vmem:[%s7360_s10] ss:$0 sm:$0xff] }
 0x55f   : > { %v6126_v8 = vpop.eup %6125 }
 0x560   : > { %v1944_v9 = vmul.f32 %v6126_v8, %v6118_v58  ;;  %v2685_v58 = vld [vmem:[%s7364_s14 + $0x10] sm:$0xff] }
 0x562   : > { %5515 = vmatmul.mubr.msk.f32.vlgmr.msra.gmra.mrb[18].mxu1 %vm1947_vm7, %v1944_v9  ;;  %v5016_v9 = vld [vmem:[%s7361_s11] ss:$0 sm:$0xff] }
 0x563   : > { %v6128_v10 = vpop.eup %6127  ;;  %5523 = vmatpush3.msk.msra.mxu1 %vm1951_vm5, %v6728_v29  ;;  %5524 = vmatprep.mubr.msk.f32.mxu1 %vm6224_vm2, %v6225_v61 }
 0x564   : > { %v1945_v11 = vmul.f32 %v6128_v10, %v6120_v60  ;;  %5532 = vmatprep.subr.mxu1 %v6225_v61  ;;  %v2686_v60 = vld [vmem:[%s7364_s14 + $0x18] sm:$0xff] }
 0x565   : > { %v5949_v62 = vpack.c.bf16 %v2686_v60, %v2685_v58 }
 0x566   : > { %5520 = vmatmul.mubr.msk.f32.vlgmr.msra.gmra.mrb[18].mxu0 %vm1947_vm7, %v1945_v11 }
 0x567   : > { %v6130_v12 = vpop.eup %6129  ;;  %5529 = vmatprep.mubr.msk.f32.mxu0 %vm6224_vm2, %v6225_v61  ;;  %5528 = vmatpush3.msra.mxu0 %v2253_v15 }
 0x568   : > { %v1946_v13 = vmul.f32 %v6130_v12, %v6122_v63  ;;  %5537 = vmatprep.subr.mxu0 %v6225_v61  ;;  %v2687_v63 = vld [vmem:[%s7364_s14 + $0x20] sm:$0xff]  ;;  %v2689_v12 = vld [vmem:[%s7364_s14 + $0x30] sm:$0xff] }
 0x569   : > { %v5952_v1 = vpack.c.bf16 %v2688_v0, %v2687_v63  ;;  %v5022_v0 = vld [vmem:[%s7353_s3 + $0x1] ss:$0 sm:$0xff] }
 0x56a   : > { %5525 = vmatmul.mubr.msk.f32.vlgmr.msra.gmra.mrb[20].mxu1 %vm1947_vm7, %v1946_v13  ;;  %v2690_v13 = vld [vmem:[%s7364_s14 + $0x38] sm:$0xff] }
 0x56b   : > { %5534 = vmatprep.mubr.msk.f32.mxu1 %vm6224_vm2, %v6225_v61  ;;  %5533 = vmatpush3.msra.mxu1 %v2254_v16  ;;  %v5955_v15 = vpack.c.bf16 %v2690_v13, %v2689_v12  ;;  %v2691_v16 = vld [vmem:[%s7364_s14 + $0x40] sm:$0xff]  ;;  %v5031_v13 = vld [vmem:[%s7355_s5 + $0xb8] sm:$0xff] }
 0x56c   : > { %5542 = vmatprep.subr.mxu1 %v6225_v61 }
 0x62d   : > { %v2021_v18 = vpop.f32.mrb[16].mxu0 }
 0x62e   : > { %v5511_v19 = vpop.f32.mrb[17].mxu0  ;;  %5530 = vmatmul.mubr.msk.f32.vlgmr.msra.gmra.mrb[20].mxu0 %vm1597_vm4, %v2021_v18 }
 0x62f   : > { %5538 = vmatpush3.msra.mxu0 %v2255_v17  ;;  %5539 = vmatprep.mubr.msk.f32.mxu0 %vm6224_vm2, %v6225_v61  ;;  %v2692_v17 = vld [vmem:[%s7364_s14 + $0x48] sm:$0xff]  ;;  %v2693_v19 = vld [vmem:[%s7364_s14 + $0x50] sm:$0xff] }
 0x630   : > { %5939 = vmatprep.subr.bf16.mxu0 %v6223_v3  ;;  %v5958_v18 = vpack.c.bf16 %v2692_v17, %v2691_v16  ;;  %v5055_v16 = vld [vmem:[%s7356_s6 + $0xd8] sm:$0xff] }
 0x635   : > { %v2097_v21 = vpop.f32.mrb[18].mxu1 }
 0x636   : > { %v5516_v14 = vpop.f32.mrb[19].mxu1  ;;  %5535 = vmatmul.mubr.msk.f32.vlgmr.msra.gmra.mrb[22].mxu1 %vm1597_vm4, %v2097_v21 }
 0x637   : > { %5543 = vmatpush3.msra.mxu1 %v2256_v20  ;;  %5544 = vmatprep.mubr.msk.f32.mxu1 %vm6224_vm2, %v6225_v61  ;;  %v2694_v20 = vld [vmem:[%s7364_s14 + $0x58] sm:$0xff]  ;;  %v2695_v14 = vld [vmem:[%s7364_s14 + $0x60] sm:$0xff] }
 0x638   : > { %5945 = vmatprep.subr.bf16.mxu1 %v6223_v3  ;;  %v5961_v21 = vpack.c.bf16 %v2694_v20, %v2693_v19  ;;  %v5032_v19 = vld [vmem:[%s7355_s5 + $0xc0] sm:$0xff]  ;;  %v5033_v20 = vld [vmem:[%s7355_s5 + $0xc8] sm:$0xff] }
 0x639   : > { %v2173_v22 = vpop.f32.mrb[18].mxu0 }
 0x63a   : > { %v5521_v23 = vpop.f32.mrb[19].mxu0  ;;  %5540 = vmatmul.mubr.msk.f32.vlgmr.msra.gmra.mrb[22].mxu0 %vm1597_vm4, %v2173_v22  ;;  %v2696_v22 = vld [vmem:[%s7364_s14 + $0x68] sm:$0xff] }
 0x63b   : > { %5555 = vmatprep.mubr.msk.f32.mxu0 %vm6224_vm2, %v6225_v61  ;;  %v5964_v23 = vpack.c.bf16 %v2696_v22, %v2695_v14  ;;  %v5065_v14 = vld [vmem:[%s7357_s7 + $0x88] sm:$0xff]  ;;  %v5982_v22 = vpack.c.bf16 %v5033_v20, %v5032_v19 }
 0x63d   : > { %v2249_v24 = vpop.f32.mrb[20].mxu1 }
 0x63e   : > { %v5526_v25 = vpop.f32.mrb[21].mxu1  ;;  %5545 = vmatmul.mubr.msk.f32.vlgmr.msra.gmra.mrb[24].mxu1 %vm1597_vm4, %v2249_v24  ;;  %v2697_v24 = vld [vmem:[%s7364_s14 + $0x70] sm:$0xff] }
 0x63f   : > { %5590 = vmatprep.mubr.msk.f32.mxu1 %vm6224_vm2, %v6225_v61  ;;  %5947 = vmatpush3.bf16.msra.mxu1 %v5946_v59  ;;  %v2698_v25 = vld [vmem:[%s7364_s14 + $0x78] sm:$0xff] }
 0x640   : > { %5948 = vmatprep.subr.bf16.mxu1 %v6223_v3 }
 0x643   : > { %5950 = vmatpush3.bf16.msra.mxu1 %v5949_v62 }
 0x644   : > { %5951 = vmatprep.subr.bf16.mxu1 %v6223_v3 }
 0x647   : > { %5953 = vmatpush3.bf16.msra.mxu1 %v5952_v1  ;;  %v5028_v1 = vld [vmem:[%s7355_s5 + $0xa0] sm:$0xff] }
 0x648   : > { %5954 = vmatprep.subr.bf16.mxu1 %v6223_v3 }
 0x64b   : > { %5956 = vmatpush3.bf16.msra.mxu1 %v5955_v15  ;;  %v5054_v15 = vld [vmem:[%s7356_s6 + $0xd0] sm:$0xff] }
 0x64c   : > { %5957 = vmatprep.subr.bf16.mxu1 %v6223_v3 }
 0x64f   : > { %5959 = vmatpush3.bf16.msra.mxu1 %v5958_v18  ;;  %v6009_v18 = vpack.c.bf16 %v5055_v16, %v5054_v15 }
 0x650   : > { %5960 = vmatprep.subr.bf16.mxu1 %v6223_v3 }
 0x653   : > { %5962 = vmatpush3.bf16.msra.mxu1 %v5961_v21  ;;  %v5064_v21 = vld [vmem:[%s7357_s7 + $0x80] sm:$0xff] }
 0x654   : > { %5963 = vmatprep.subr.bf16.mxu1 %v6223_v3 }
 0x657   : > { %5965 = vmatpush3.bf16.msra.mxu1 %v5964_v23  ;;  %v6018_v23 = vpack.c.bf16 %v5065_v14, %v5064_v21 }
 0x658   : > { %5966 = vmatprep.subr.bf16.mxu1 %v6223_v3 }
 0x701   : > { %v2326_v26 = vpop.f32.mrb[20].mxu0 }
 0x702   : > { %v5531_v27 = vpop.f32.mrb[21].mxu0  ;;  %v2549_v29 = vsel %vm676_vm1, %v2326_v26, 0.0  ;;  %v5967_v26 = vpack.c.bf16 %v2698_v25, %v2697_v24  ;;  %v5034_v24 = vld [vmem:[%s7355_s5 + $0xd0] sm:$0xff]  ;;  %v5035_v25 = vld [vmem:[%s7355_s5 + $0xd8] sm:$0xff] }
 0x703   : > { %v5017_v27 = vld [vmem:[%s7363_s13] ss:$0 sm:$0xff] }
 0x704   : > { %5968 = vmatpush3.bf16.msra.mxu1 %v5967_v26  ;;  %v5066_v26 = vld [vmem:[%s7357_s7 + $0x90] sm:$0xff] }
 0x705   : > { %5993 = vmatprep.subr.bf16.mxu1 %v6223_v3 }
 0x709   : > { %v2399_v28 = vpop.f32.mrb[22].mxu1 }
 0x70a   : > { %v2550_v30 = vsel %vm676_vm1, %v2399_v28, 0.0  ;;  %v5536_v31 = vpop.f32.mrb[23].mxu1 }
 0x70b   : > { %v2551_v32 = vadd.f32 %v2550_v30, %v2549_v29 }
 0x70d   : > { %v2472_v33 = vpop.f32.mrb[22].mxu0 }
 0x70e   : > { %v2552_v34 = vsel %vm676_vm1, %v2472_v33, 0.0  ;;  %v5541_v35 = vpop.f32.mrb[23].mxu0 }
 0x70f   : > { %v2553_v36 = vadd.f32 %v2552_v34, %v2551_v32 }
 0x711   : > { %v2545_v37 = vpop.f32.mrb[24].mxu1 }
 0x712   : > { %v2554_v38 = vsel %vm676_vm1, %v2545_v37, 0.0  ;;  %v5546_v40 = vpop.f32.mrb[25].mxu1 }
 0x713   : > { %v2555_v42 = vadd.f32 %v2554_v38, %v2553_v36  ;;  %v5019_v36 = vld [vmem:[%s7365_s15] ss:$0 sm:$0xff] }
 0x715   : > { %v2563_v43 = vadd.f32 %v5014_v39, %v2555_v42 }
 0x717   : > { %v6792_v44 = vadd.f32 %v2563_v43, %v6468_v41  ;;  %v2595_v41 = vld [vmem:[%s7362_s12 + $0x8] sm:$0xff] }
 0x718   : > { %v5940_v52 = vpack.c.bf16 %v2595_v41, %v2594_v51  ;;  %v5045_v41 = vld [vmem:[%s7356_s6 + $0x88] sm:$0xff] }
 0x719   : > { %v2567_v45 = vsel %vm676_vm1, %v6792_v44, 0.0 }
 0x71a   : > { %2568 = vadd.xlane.f32.xlu0 %v2567_v45  ;;  %5941 = vmatpush3.bf16.msra.mxu0 %v5940_v52 }
 0x71b   : > { %5942 = vmatprep.subr.bf16.mxu0 %v6223_v3 }
 0x71e   : > { %5944 = vmatpush3.bf16.msra.mxu0 %v5943_v55  ;;  %v5046_v55 = vld [vmem:[%s7356_s6 + $0x90] sm:$0xff] }
 0x71f   : > { %5969 = vmatprep.subr.bf16.mxu0 %v6223_v3  ;;  %v5997_v58 = vpack.c.bf16 %v5047_v57, %v5046_v55  ;;  %v5068_v55 = vld [vmem:[%s7357_s7 + $0xa0] sm:$0xff] }
 0x7a7   : > { %v2569_v46 = vpop.xlane.xlu0 %2568 }
 0x7a8   : > { %v2570_v47 = vmul.f32 0.03125, %v2569_v46 }
 0x7aa   : > { %v2571_v48 = vsub.f32 %v6792_v44, %v2570_v47 }
 0x7ac   : > { %v2572_v49 = vmul.f32 %v2571_v48, %v2571_v48 }
 0x7ae   : > { %v2573_v50 = vsel %vm676_vm1, %v2572_v49, 0.0  ;;  %v5024_v49 = vld [vmem:[%s7355_s5 + $0x80] sm:$0xff] }
 0x7af   : > { %2574 = vadd.xlane.f32.xlu1 %v2573_v50  ;;  %v5044_v50 = vld [vmem:[%s7356_s6 + $0x80] sm:$0xff] }
 0x7b0   : > { %v5994_v52 = vpack.c.bf16 %v5045_v41, %v5044_v50  ;;  %v5056_v50 = vld [vmem:[%s7356_s6 + $0xe0] sm:$0xff] }
 0x83c   : > { %v2575_v2 = vpop.xlane.xlu1 %2574 }
 0x83d   : > { %v2576_v4 = vmul.f32 0.03125, %v2575_v2 }
 0x83f   : > { %v2577_v5 = vadd.f32 1e-05, %v2576_v4  ;;  %v5029_v4 = vld [vmem:[%s7355_s5 + $0xa8] sm:$0xff] }
 0x841   : > { %6131 = vrsqrt.f32 %v2577_v5  ;;  %v5052_v5 = vld [vmem:[%s7356_s6 + $0xc0] sm:$0xff] }
 0x84b   : > { %v6132_v6 = vpop.eup %6131 }
 0x84c   : > { %v2579_v8 = vmul.f32 %v6132_v6, %v2571_v48  ;;  %v5053_v6 = vld [vmem:[%s7356_s6 + $0xc8] sm:$0xff] }
 0x84e   : > { %v2586_v10 = vmul.f32 %v5015_v7, %v2579_v8  ;;  %v5023_v7 = vld [vmem:[%s7354_s4 + $0x1] ss:$0 sm:$0xff] }
 0x850   : > { %v2593_v11 = vadd.f32 %v5016_v9, %v2586_v10  ;;  %v5976_v9 = vpack.c.bf16 %v5029_v4, %v5028_v1  ;;  %v6006_v10 = vpack.c.bf16 %v5053_v6, %v5052_v5  ;;  %v5078_v1 = vld [vmem:[%s7357_s7 + $0xf0] sm:$0xff] }
 0x852   : > { %5556 = vmatmul.mubr.msk.f32.vlgmr.msra.gmra.mrb[24].mxu0 %vm721_vm3, %v2593_v11  ;;  %v5030_v11 = vld [vmem:[%s7355_s5 + $0xb0] sm:$0xff] }
 0x853   : > { %5601 = vmatprep.mubr.msk.f32.mxu0 %vm6224_vm2, %v6225_v61  ;;  %v5979_v17 = vpack.c.bf16 %v5031_v13, %v5030_v11 }
 0x925   : > { %v2674_v28 = vpop.f32.mrb[24].mxu0 }
 0x926   : > { %v2675_v29 = vadd.f32 %v5017_v27, %v2674_v28  ;;  %v5557_v30 = vpop.f32.mrb[25].mxu0  ;;  %v5067_v27 = vld [vmem:[%s7357_s7 + $0x98] sm:$0xff]  ;;  %v5985_v28 = vpack.c.bf16 %v5035_v25, %v5034_v24 }
 0x927   : > { %v5036_v30 = vld [vmem:[%s7355_s5 + $0xe0] sm:$0xff] }
 0x928   : > { %v2679_v31 = vmul.f32 0.70710677, %v2675_v29  ;;  %v2678_v33 = vmul.f32 0.5, %v2675_v29  ;;  %v6021_v29 = vpack.c.bf16 %v5067_v27, %v5066_v26 }
 0x92a   : > { %6133 = verf.f32 %v2679_v31  ;;  %v5037_v31 = vld [vmem:[%s7355_s5 + $0xe8] sm:$0xff] }
 0x934   : > { %v6134_v32 = vpop.eup %6133 }
 0x935   : > { %v2681_v34 = vadd.f32 1.0, %v6134_v32  ;;  %v5072_v32 = vld [vmem:[%s7357_s7 + $0xc0] sm:$0xff] }
 0x937   : > { %v2682_v35 = vmul.f32 %v2681_v34, %v2678_v33  ;;  %v5073_v33 = vld [vmem:[%s7357_s7 + $0xc8] sm:$0xff]  ;;  %v5988_v34 = vpack.c.bf16 %v5037_v31, %v5036_v30 }
 0x939   : > { %5591 = vmatmul.mubr.f32.vlgmr.msra.gmra.mrb[26].mxu1 %v2682_v35  ;;  %v6030_v35 = vpack.c.bf16 %v5073_v33, %v5072_v32 }
 0x93a   : > { %5645 = vmatprep.mubr.msk.f32.mxu1 %vm6224_vm2, %v6225_v61  ;;  %5995 = vmatpush3.bf16.msra.mxu1 %v5994_v52  ;;  %v5058_v52 = vld [vmem:[%s7356_s6 + $0xf0] sm:$0xff] }
 0x93b   : > { %5996 = vmatprep.subr.bf16.mxu1 %v6223_v3  ;;  %v6015_v54 = vpack.c.bf16 %v5059_v53, %v5058_v52 }
 0x93e   : > { %5998 = vmatpush3.bf16.msra.mxu1 %v5997_v58  ;;  %v5070_v58 = vld [vmem:[%s7357_s7 + $0xb0] sm:$0xff] }
 0x93f   : > { %6005 = vmatprep.subr.bf16.mxu1 %v6223_v3 }
 0xa0c   : > { %v2772_v37 = vpop.f32.mrb[26].mxu1 }
 0xa0d   : > { %v2773_v38 = vadd.f32 %v5019_v36, %v2772_v37  ;;  %v5592_v39 = vpop.f32.mrb[27].mxu1  ;;  %v5038_v36 = vld [vmem:[%s7355_s5 + $0xf0] sm:$0xff]  ;;  %v5039_v37 = vld [vmem:[%s7355_s5 + $0xf8] sm:$0xff] }
 0xa0e   : > { %v5075_v39 = vld [vmem:[%s7357_s7 + $0xd8] sm:$0xff] }
 0xa0f   : > { %v6886_v40 = vadd.f32 %v2773_v38, %v6792_v44  ;;  %v5025_v44 = vld [vmem:[%s7355_s5 + $0x88] sm:$0xff]  ;;  %v5074_v38 = vld [vmem:[%s7357_s7 + $0xd0] sm:$0xff] }
 0xa10   : > { %v5970_v51 = vpack.c.bf16 %v5025_v44, %v5024_v49  ;;  %v5051_v49 = vld [vmem:[%s7356_s6 + $0xb8] sm:$0xff] }
 0xa11   : > { %v2781_v42 = vsel %vm676_vm1, %v6886_v40, 0.0 }
 0xa12   : > { %2782 = vadd.xlane.f32.xlu0 %v2781_v42  ;;  %5971 = vmatpush3.bf16.msra.mxu0 %v5970_v51  ;;  %v5991_v42 = vpack.c.bf16 %v5039_v37, %v5038_v36  ;;  %v5057_v51 = vld [vmem:[%s7356_s6 + $0xe8] sm:$0xff] }
 0xa13   : > { %5972 = vmatprep.subr.bf16.mxu0 %v6223_v3  ;;  %v6012_v41 = vpack.c.bf16 %v5057_v51, %v5056_v50 }
 0xa16   : > { %5974 = vmatpush3.bf16.msra.mxu0 %v5973_v56  ;;  %v5069_v56 = vld [vmem:[%s7357_s7 + $0xa8] sm:$0xff] }
 0xa17   : > { %5975 = vmatprep.subr.bf16.mxu0 %v6223_v3  ;;  %v6024_v57 = vpack.c.bf16 %v5069_v56, %v5068_v55 }
 0xa9f   : > { %v2783_v43 = vpop.xlane.xlu0 %2782 }
 0xaa0   : > { %v2784_v45 = vmul.f32 0.03125, %v2783_v43  ;;  %v6033_v43 = vpack.c.bf16 %v5075_v39, %v5074_v38 }
 0xaa2   : > { %v2785_v46 = vsub.f32 %v6886_v40, %v2784_v45  ;;  %v5048_v45 = vld [vmem:[%s7356_s6 + $0xa0] sm:$0xff] }
 0xaa4   : > { %v2786_v47 = vmul.f32 %v2785_v46, %v2785_v46 }
 0xaa6   : > { %v2787_v48 = vsel %vm676_vm1, %v2786_v47, 0.0 }
 0xaa7   : > { %2788 = vadd.xlane.f32.xlu1 %v2787_v48  ;;  %v5050_v48 = vld [vmem:[%s7356_s6 + $0xb0] sm:$0xff] }
 0xaa8   : > { %v6003_v44 = vpack.c.bf16 %v5051_v49, %v5050_v48 }
 0xb34   : > { %v2789_v59 = vpop.xlane.xlu1 %2788 }
 0xb35   : > { %v2790_v60 = vmul.f32 0.03125, %v2789_v59  ;;  %v5071_v59 = vld [vmem:[%s7357_s7 + $0xb8] sm:$0xff] }
 0xb37   : > { %v2791_v62 = vadd.f32 1e-05, %v2790_v60  ;;  %v6027_v60 = vpack.c.bf16 %v5071_v59, %v5070_v58 }
 0xb39   : > { %6135 = vrsqrt.f32 %v2791_v62  ;;  %v5076_v62 = vld [vmem:[%s7357_s7 + $0xe0] sm:$0xff] }
 0xb43   : > { %v6136_v63 = vpop.eup %6135 }
 0xb44   : > { %v2793_v2 = vmul.f32 %v6136_v63, %v2785_v46  ;;  %v5049_v46 = vld [vmem:[%s7356_s6 + $0xa8] sm:$0xff] }
 0xb45   : > { %v6000_v47 = vpack.c.bf16 %v5049_v46, %v5048_v45  ;;  %v5077_v63 = vld [vmem:[%s7357_s7 + $0xe8] sm:$0xff] }
 0xb46   : > { %v2800_v8 = vmul.f32 %v5022_v0, %v2793_v2  ;;  %v6036_v0 = vpack.c.bf16 %v5077_v63, %v5076_v62  ;;  %v5079_v2 = vld [vmem:[%s7357_s7 + $0xf8] sm:$0xff] }
 0xb47   : > { %v6039_v4 = vpack.c.bf16 %v5079_v2, %v5078_v1 }
 0xb48   : > { %v6941_v12 = vadd.f32 %v5023_v7, %v2800_v8 }
 0xb4a   : > { %5602 = vmatmul.mubr.msk.f32.vlgmr.msra.gmra.mrb[26].mxu0 %vm721_vm3, %v6941_v12  ;;  %5646 = vmatmul.mubr.msk.f32.vlgmr.msra.gmra.mrb[28].mxu1 %vm721_vm3, %v6941_v12 }
 0xb4b   : > { %5977 = vmatpush3.bf16.msra.mxu0 %v5976_v9  ;;  %6007 = vmatpush3.bf16.msra.mxu1 %v6006_v10 }
 0xb4c   : > { %5978 = vmatprep.subr.bf16.mxu0 %v6223_v3  ;;  %6008 = vmatprep.subr.bf16.mxu1 %v6223_v3 }
 0xb4d   : > { %5612 = vmatprep.mubr.msk.f32.mxu0 %vm6224_vm2, %v6225_v61  ;;  %5667 = vmatprep.mubr.msk.f32.mxu1 %vm6224_vm2, %v6225_v61 }
 0xb4f   : > { %5980 = vmatpush3.bf16.msra.mxu0 %v5979_v17  ;;  %6010 = vmatpush3.bf16.msra.mxu1 %v6009_v18 }
 0xb50   : > { %5981 = vmatprep.subr.bf16.mxu0 %v6223_v3  ;;  %6017 = vmatprep.subr.bf16.mxu1 %v6223_v3 }
 0xb52   : > { %5613 = vmatmul.mubr.msk.f32.vlgmr.msra.gmra.mrb[28].mxu0 %vm721_vm3, %v6941_v12  ;;  %5668 = vmatmul.mubr.msk.f32.vlgmr.msra.gmra.mrb[30].mxu1 %vm721_vm3, %v6941_v12 }
 0xb53   : > { %5983 = vmatpush3.bf16.msra.mxu0 %v5982_v22  ;;  %6019 = vmatpush3.bf16.msra.mxu1 %v6018_v23 }
 0xb54   : > { %5984 = vmatprep.subr.bf16.mxu0 %v6223_v3  ;;  %6020 = vmatprep.subr.bf16.mxu1 %v6223_v3 }
 0xb55   : > { %5623 = vmatprep.mubr.msk.f32.mxu0 %vm6224_vm2, %v6225_v61  ;;  %5689 = vmatprep.mubr.msk.f32.mxu1 %vm6224_vm2, %v6225_v61 }
 0xb57   : > { %5986 = vmatpush3.bf16.msra.mxu0 %v5985_v28  ;;  %6022 = vmatpush3.bf16.msra.mxu1 %v6021_v29 }
 0xb58   : > { %5987 = vmatprep.subr.bf16.mxu0 %v6223_v3  ;;  %6029 = vmatprep.subr.bf16.mxu1 %v6223_v3 }
 0xb5a   : > { %5624 = vmatmul.mubr.msk.f32.vlgmr.msra.gmra.mrb[30].mxu0 %vm721_vm3, %v6941_v12  ;;  %5690 = vmatmul.mubr.msk.f32.vlgmr.msra.gmra.mrb[32].mxu1 %vm721_vm3, %v6941_v12 }
 0xb5b   : > { %5989 = vmatpush3.bf16.msra.mxu0 %v5988_v34  ;;  %6031 = vmatpush3.bf16.msra.mxu1 %v6030_v35 }
 0xb5c   : > { %5990 = vmatprep.subr.bf16.mxu0 %v6223_v3  ;;  %6032 = vmatprep.subr.bf16.mxu1 %v6223_v3 }
 0xb5d   : > { %5634 = vmatprep.mubr.msk.f32.mxu0 %vm6224_vm2, %v6225_v61  ;;  %5711 = vmatprep.mubr.msk.f32.mxu1 %vm6224_vm2, %v6225_v61 }
 0xb5f   : > { %5992 = vmatpush3.bf16.msra.mxu0 %v5991_v42  ;;  %6034 = vmatpush3.bf16.msra.mxu1 %v6033_v43 }
 0xb60   : > { %5999 = vmatprep.subr.bf16.mxu0 %v6223_v3  ;;  %5725 = vmatprep.subr.mxu1 %v6225_v61 }
 0xb62   : > { %5635 = vmatmul.mubr.msk.f32.vlgmr.msra.gmra.mrb[32].mxu0 %vm721_vm3, %v6941_v12  ;;  %5712 = vmatmul.mubr.msk.f32.vlgmr.msra.gmra.mrb[34].mxu1 %vm721_vm3, %v6941_v12 }
 0xb63   : > { %6001 = vmatpush3.bf16.msra.mxu0 %v6000_v47  ;;  %5656 = vmatprep.mubr.msk.f32.mxu0 %vm6224_vm2, %v6225_v61 }
 0xb64   : > { %6002 = vmatprep.subr.bf16.mxu0 %v6223_v3  ;;  %5727 = vmatprep.mubr.msk.f32.mxu1 %vm6224_vm2, %v6225_v61 }
 0xb67   : > { %6004 = vmatpush3.bf16.msra.mxu0 %v6003_v44 }
 0xb68   : > { %6011 = vmatprep.subr.bf16.mxu0 %v6223_v3 }
 0xb6a   : > { %5657 = vmatmul.mubr.msk.f32.vlgmr.msra.gmra.mrb[34].mxu0 %vm721_vm3, %v6941_v12 }
 0xb6b   : > { %6013 = vmatpush3.bf16.msra.mxu0 %v6012_v41  ;;  %5678 = vmatprep.mubr.msk.f32.mxu0 %vm6224_vm2, %v6225_v61 }
 0xb6c   : > { %6014 = vmatprep.subr.bf16.mxu0 %v6223_v3 }
 0xb6f   : > { %6016 = vmatpush3.bf16.msra.mxu0 %v6015_v54 }
 0xb70   : > { %6023 = vmatprep.subr.bf16.mxu0 %v6223_v3 }
 0xb72   : > { %5679 = vmatmul.mubr.msk.f32.vlgmr.msra.gmra.mrb[36].mxu0 %vm721_vm3, %v6941_v12 }
 0xb73   : > { %6025 = vmatpush3.bf16.msra.mxu0 %v6024_v57  ;;  %5700 = vmatprep.mubr.msk.f32.mxu0 %vm6224_vm2, %v6225_v61 }
 0xb74   : > { %6026 = vmatprep.subr.bf16.mxu0 %v6223_v3 }
 0xb77   : > { %6028 = vmatpush3.bf16.msra.mxu0 %v6027_v60 }
 0xb78   : > { %6035 = vmatprep.subr.bf16.mxu0 %v6223_v3 }
 0xb7a   : > { %5701 = vmatmul.mubr.msk.f32.vlgmr.msra.gmra.mrb[38].mxu0 %vm721_vm3, %v6941_v12 }
 0xb7b   : > { %6037 = vmatpush3.bf16.msra.mxu0 %v6036_v0  ;;  %5722 = vmatprep.mubr.msk.f32.mxu0 %vm6224_vm2, %v6225_v61 }
 0xb7c   : > { %6038 = vmatprep.subr.bf16.mxu0 %v6223_v3 }
 0xb7f   : > { %6040 = vmatpush3.bf16.msra.mxu0 %v6039_v4 }
 0xb80   : > { %5735 = vmatprep.subr.mxu0 %v6225_v61 }
 0xb82   : > { %5723 = vmatmul.mubr.msk.f32.vlgmr.msra.gmra.mrb[40].mxu0 %vm721_vm3, %v6941_v12 }
 0xb83   : > { %5737 = vmatprep.mubr.msk.f32.mxu0 %vm6224_vm2, %v6225_v61 }
 0xc1d   : > { %v2894_v5 = vpop.f32.mrb[26].mxu0  ;;  %v3191_v6 = vpop.f32.mrb[28].mxu1 }
 0xc1e   : > { %v5603_v7 = vpop.f32.mrb[27].mxu0  ;;  %v5647_v8 = vpop.f32.mrb[29].mxu1  ;;  %5726 = vmatpush3.xpose.msk.msra.mxu1 %vm1597_vm4, %v3191_v6 }
 0xc1f   : > { %5730 = vmatprep.subr.mxu1 %v6225_v61 }
 0xc21   : > { %5728 = vmatmul.mubr.msk.f32.vlgmr.msra.gmra.mrb[36].mxu1 %vm1597_vm4, %v2894_v5 }
 0xc22   : > { %5732 = vmatprep.mubr.msk.f32.mxu1 %vm6224_vm2, %v6225_v61 }
 0xc25   : > { %v2964_v9 = vpop.f32.mrb[28].mxu0  ;;  %v3331_v10 = vpop.f32.mrb[30].mxu1 }
 0xc26   : > { %v5614_v11 = vpop.f32.mrb[29].mxu0  ;;  %v5669_v12 = vpop.f32.mrb[31].mxu1  ;;  %5736 = vmatpush3.xpose.msk.msra.mxu0 %vm1597_vm4, %v3331_v10 }
 0xc27   : > { %5745 = vmatprep.subr.mxu0 %v6225_v61  ;;  %v5100_v12 = vld [vmem:[%s7358_s8 + $0x20] sm:$0xff] }
 0xc2d   : > { %v3034_v13 = vpop.f32.mrb[30].mxu0  ;;  %v3488_v15 = vpop.f32.mrb[32].mxu1 }
 0xc2e   : > { %v5625_v16 = vpop.f32.mrb[31].mxu0  ;;  %v5691_v17 = vpop.f32.mrb[33].mxu1  ;;  %5738 = vmatmul.mubr.msk.f32.vlgmr.msra.gmra.mrb[42].mxu0 %vm1597_vm4, %v3034_v13  ;;  %v5101_v13 = vld [vmem:[%s7358_s8 + $0x28] sm:$0xff] }
 0xc2f   : > { %5746 = vmatpush3.msk.msra.mxu0 %vm1951_vm5, %v3488_v15  ;;  %5747 = vmatprep.mubr.msk.f32.mxu0 %vm6224_vm2, %v6225_v61  ;;  %v5102_v15 = vld [vmem:[%s7358_s8 + $0x30] sm:$0xff] }
 0xc30   : > { %5755 = vmatprep.subr.mxu0 %v6225_v61 }
 0xc35   : > { %v3104_v18 = vpop.f32.mrb[32].mxu0  ;;  %v7128_v19 = vpop.f32.mrb[34].mxu1 }
 0xc36   : > { %v5636_v20 = vpop.f32.mrb[33].mxu0  ;;  %v5713_v21 = vpop.f32.mrb[35].mxu1 }
 0xc37   : > { %v5103_v20 = vld [vmem:[%s7358_s8 + $0x38] sm:$0xff] }
 0xc3d   : > { %v3261_v14 = vpop.f32.mrb[34].mxu0 }
 0xc3e   : > { %v5658_v22 = vpop.f32.mrb[35].mxu0  ;;  %5731 = vmatpush3.xpose.msk.msra.mxu1 %vm1597_vm4, %v3261_v14 }
 0xc3f   : > { %5740 = vmatprep.subr.mxu1 %v6225_v61 }
 0xc41   : > { %5733 = vmatmul.mubr.msk.f32.vlgmr.msra.gmra.mrb[38].mxu1 %vm1597_vm4, %v2964_v9 }
 0xc42   : > { %5742 = vmatprep.mubr.msk.f32.mxu1 %vm6224_vm2, %v6225_v61 }
 0xc45   : > { %v3401_v23 = vpop.f32.mrb[36].mxu0 }
 0xc46   : > { %v5680_v24 = vpop.f32.mrb[37].mxu0  ;;  %5741 = vmatpush3.xpose.msk.msra.mxu1 %vm1597_vm4, %v3401_v23 }
 0xc47   : > { %5750 = vmatprep.subr.mxu1 %v6225_v61 }
 0xc49   : > { %5743 = vmatmul.mubr.msk.f32.vlgmr.msra.gmra.mrb[40].mxu1 %vm1597_vm4, %v3104_v18 }
 0xc4a   : > { %5752 = vmatprep.mubr.msk.f32.mxu1 %vm6224_vm2, %v6225_v61 }
 0xc4d   : > { %v3558_v25 = vpop.f32.mrb[38].mxu0 }
 0xc4e   : > { %v5702_v26 = vpop.f32.mrb[39].mxu0  ;;  %5751 = vmatpush3.msk.msra.mxu1 %vm1951_vm5, %v3558_v25 }
 0xc4f   : > { %5760 = vmatprep.subr.mxu1 %v6225_v61 }
 0xc55   : > { %v7142_v27 = vpop.f32.mrb[40].mxu0 }
 0xc56   : > { %v5724_v28 = vpop.f32.mrb[41].mxu0 }
 0xcf4   : > { %v3774_v29 = vpop.f32.mrb[36].mxu1 }
 0xcf5   : > { %v5729_v30 = vpop.f32.mrb[37].mxu1  ;;  %v4006_v31 = vsel %vm1902_vm6, %v3774_v29, -inf }
 0xcf6   : > { %4007 = vmax.xlane.f32.xlu0 %v4006_v31 }
 0xd01   : > { %v3926_v32 = vpop.f32.mrb[42].mxu0 }
 0xd02   : > { %v5739_v33 = vpop.f32.mrb[43].mxu0  ;;  %v4012_v34 = vsel %vm1902_vm6, %v3926_v32, -inf }
 0xd03   : > { %4013 = vmax.xlane.f32.xlu0 %v4012_v34 }
 0xd14   : > { %v3850_v35 = vpop.f32.mrb[38].mxu1 }
 0xd15   : > { %v5734_v36 = vpop.f32.mrb[39].mxu1  ;;  %v4009_v37 = vsel %vm1902_vm6, %v3850_v35, -inf }
 0xd16   : > { %4010 = vmax.xlane.f32.xlu1 %v4009_v37 }
 0xd1c   : > { %v4002_v38 = vpop.f32.mrb[40].mxu1 }
 0xd1d   : > { %v5744_v39 = vpop.f32.mrb[41].mxu1  ;;  %v4015_v42 = vsel %vm1902_vm6, %v4002_v38, -inf }
 0xd1e   : > { %4016 = vmax.xlane.f32.xlu1 %v4015_v42 }
 0xd83   : > { %v4008_v43 = vpop.xlane.xlu0 %4007 }
 0xd84   : > { %v4018_v45 = vsub.f32 %v3774_v29, %v4008_v43 }
 0xd86   : > { %v4022_v46 = vmul.f32 1.442695, %v4018_v45 }
 0xd88   : > { %6137 = vpow2.f32 %v4022_v46 }
 0xd90   : > { %v4014_v47 = vpop.xlane.xlu0 %4013 }
 0xd91   : > { %v4020_v48 = vsub.f32 %v3926_v32, %v4014_v47 }
 0xd92   : > { %v6138_v49 = vpop.eup %6137 }
 0xd93   : > { %v4026_v44 = vmul.f32 1.442695, %v4020_v48  ;;  %v4030_v50 = vsel %vm1902_vm6, %v6138_v49, 0.0 }
 0xd94   : > { %4031 = vadd.xlane.f32.xlu0 %v4030_v50 }
 0xd95   : > { %6139 = vpow2.f32 %v4026_v44  ;;  %v5114_v44 = vld [vmem:[%s7362_s12 + $0x20] sm:$0xff] }
 0xd9f   : > { %v6140_v51 = vpop.eup %6139 }
 0xda0   : > { %v4036_v41 = vsel %vm1902_vm6, %v6140_v51, 0.0 }
 0xda1   : > { %4037 = vadd.xlane.f32.xlu0 %v4036_v41  ;;  %v5117_v41 = vld [vmem:[%s7362_s12 + $0x38] sm:$0xff] }
 0xda3   : > { %v4011_v52 = vpop.xlane.xlu1 %4010 }
 0xda4   : > { %v4019_v53 = vsub.f32 %v3850_v35, %v4011_v52 }
 0xda6   : > { %v4024_v54 = vmul.f32 1.442695, %v4019_v53  ;;  %v5121_v53 = vld [vmem:[%s7364_s14 + $0x80] sm:$0xff] }
 0xda8   : > { %6141 = vpow2.f32 %v4024_v54  ;;  %v5122_v54 = vld [vmem:[%s7364_s14 + $0x88] sm:$0xff] }
 0xdab   : > { %v4017_v55 = vpop.xlane.xlu1 %4016 }
 0xdac   : > { %v4021_v56 = vsub.f32 %v4002_v38, %v4017_v55  ;;  %v5123_v55 = vld [vmem:[%s7364_s14 + $0x90] sm:$0xff] }
 0xdae   : > { %v4028_v57 = vmul.f32 1.442695, %v4021_v56  ;;  %v6048_v56 = vpack.c.bf16 %v5122_v54, %v5121_v53 }
 0xdb0   : > { %6143 = vpow2.f32 %v4028_v57  ;;  %v5124_v57 = vld [vmem:[%s7364_s14 + $0x98] sm:$0xff] }
 0xdb2   : > { %v6142_v58 = vpop.eup %6141 }
 0xdb3   : > { %v4033_v59 = vsel %vm1902_vm6, %v6142_v58, 0.0 }
 0xdb4   : > { %4034 = vadd.xlane.f32.xlu1 %v4033_v59  ;;  %v5125_v59 = vld [vmem:[%s7364_s14 + $0xa0] sm:$0xff] }
 0xdba   : > { %v6144_v60 = vpop.eup %6143 }
 0xdbb   : > { %v4039_v62 = vsel %vm1902_vm6, %v6144_v60, 0.0 }
 0xdbc   : > { %4040 = vadd.xlane.f32.xlu1 %v4039_v62 }
 0xe21   : > { %v4032_v63 = vpop.xlane.xlu0 %4031 }
 0xe22   : > { %6145 = vrcp.f32 %v4032_v63 }
 0xe2c   : > { %v6146_v0 = vpop.eup %6145 }
 0xe2d   : > { %v4046_v1 = vmul.f32 %v6146_v0, %v6138_v49 }
 0xe2e   : > { %v4038_v2 = vpop.xlane.xlu0 %4037 }
 0xe2f   : > { %6147 = vrcp.f32 %v4038_v2  ;;  %5748 = vmatmul.mubr.msk.f32.vlgmr.msra.gmra.mrb[44].mxu0 %vm1947_vm7, %v4046_v1 }
 0xe30   : > { %5756 = vmatpush3.msk.msra.mxu0 %vm1951_vm5, %v7128_v19  ;;  %5757 = vmatprep.mubr.msk.f32.mxu0 %vm6224_vm2, %v6225_v61 }
 0xe31   : > { %5765 = vmatprep.subr.mxu0 %v6225_v61 }
 0xe39   : > { %v6148_v4 = vpop.eup %6147 }
 0xe3a   : > { %v4048_v5 = vmul.f32 %v6148_v4, %v6140_v51  ;;  %v5116_v51 = vld [vmem:[%s7362_s12 + $0x30] sm:$0xff]  ;;  %v5112_v4 = vld [vmem:[%s7360_s10 + $0x1] ss:$0 sm:$0xff] }
 0xe3b   : > { %v6045_v52 = vpack.c.bf16 %v5117_v41, %v5116_v51 }
 0xe3c   : > { %5758 = vmatmul.mubr.msk.f32.vlgmr.msra.gmra.mrb[46].mxu0 %vm1947_vm7, %v4048_v5 }
 0xe3d   : > { %5767 = vmatprep.mubr.msk.f32.mxu0 %vm6224_vm2, %v6225_v61  ;;  %5766 = vmatpush3.msra.mxu0 %v5100_v12  ;;  %v5129_v12 = vld [vmem:[%s7364_s14 + $0xc0] sm:$0xff] }
 0xe3e   : > { %5775 = vmatprep.subr.mxu0 %v6225_v61 }
 0xe41   : > { %v4035_v6 = vpop.xlane.xlu1 %4034 }
 0xe42   : > { %6149 = vrcp.f32 %v4035_v6  ;;  %v5113_v6 = vld [vmem:[%s7361_s11 + $0x1] ss:$0 sm:$0xff] }
 0xe49   : > { %v4041_v7 = vpop.xlane.xlu1 %4040 }
 0xe4a   : > { %6151 = vrcp.f32 %v4041_v7 }
 0xe4c   : > { %v6150_v8 = vpop.eup %6149 }
 0xe4d   : > { %v4047_v9 = vmul.f32 %v6150_v8, %v6142_v58  ;;  %v6051_v58 = vpack.c.bf16 %v5124_v57, %v5123_v55 }
 0xe4f   : > { %5753 = vmatmul.mubr.msk.f32.vlgmr.msra.gmra.mrb[42].mxu1 %vm1947_vm7, %v4047_v9  ;;  %v5127_v9 = vld [vmem:[%s7364_s14 + $0xb0] sm:$0xff] }
 0xe50   : > { %5761 = vmatpush3.msk.msra.mxu1 %vm1951_vm5, %v7142_v27  ;;  %5762 = vmatprep.mubr.msk.f32.mxu1 %vm6224_vm2, %v6225_v61 }
 0xe51   : > { %5770 = vmatprep.subr.mxu1 %v6225_v61 }
 0xe54   : > { %v6152_v10 = vpop.eup %6151 }
 0xe55   : > { %v4049_v11 = vmul.f32 %v6152_v10, %v6144_v60  ;;  %v5126_v60 = vld [vmem:[%s7364_s14 + $0xa8] sm:$0xff]  ;;  %v5128_v10 = vld [vmem:[%s7364_s14 + $0xb8] sm:$0xff] }
 0xe56   : > { %v6054_v62 = vpack.c.bf16 %v5126_v60, %v5125_v59 }
 0xe57   : > { %5763 = vmatmul.mubr.msk.f32.vlgmr.msra.gmra.mrb[44].mxu1 %vm1947_vm7, %v4049_v11  ;;  %v6057_v11 = vpack.c.bf16 %v5128_v10, %v5127_v9 }
 0xe58   : > { %5772 = vmatprep.mubr.msk.f32.mxu1 %vm6224_vm2, %v6225_v61  ;;  %5771 = vmatpush3.msra.mxu1 %v5101_v13  ;;  %v5130_v13 = vld [vmem:[%s7364_s14 + $0xc8] sm:$0xff] }
 0xe59   : > { %5780 = vmatprep.subr.mxu1 %v6225_v61 }
 0xf02   : > { %v4122_v16 = vpop.f32.mrb[44].mxu0 }
 0xf03   : > { %v5749_v17 = vpop.f32.mrb[45].mxu0  ;;  %5768 = vmatmul.mubr.msk.f32.vlgmr.msra.gmra.mrb[48].mxu0 %vm1597_vm4, %v4122_v16  ;;  %v5131_v16 = vld [vmem:[%s7364_s14 + $0xd0] sm:$0xff] }
 0xf04   : > { %5776 = vmatpush3.msra.mxu0 %v5102_v15  ;;  %5777 = vmatprep.mubr.msk.f32.mxu0 %vm6224_vm2, %v6225_v61  ;;  %v6060_v15 = vpack.c.bf16 %v5130_v13, %v5129_v12  ;;  %v5132_v17 = vld [vmem:[%s7364_s14 + $0xd8] sm:$0xff] }
 0xf05   : > { %6041 = vmatprep.subr.bf16.mxu0 %v6223_v3 }
 0xf0f   : > { %v4274_v18 = vpop.f32.mrb[46].mxu0 }
 0xf10   : > { %v5759_v19 = vpop.f32.mrb[47].mxu0  ;;  %5778 = vmatmul.mubr.msk.f32.vlgmr.msra.gmra.mrb[50].mxu0 %vm1597_vm4, %v4274_v18  ;;  %v6063_v18 = vpack.c.bf16 %v5132_v17, %v5131_v16 }
 0xf11   : > { %5793 = vmatprep.mubr.msk.f32.mxu0 %vm6224_vm2, %v6225_v61  ;;  %v5133_v19 = vld [vmem:[%s7364_s14 + $0xe0] sm:$0xff] }
 0xf22   : > { %v4198_v21 = vpop.f32.mrb[42].mxu1 }
 0xf23   : > { %v5754_v14 = vpop.f32.mrb[43].mxu1  ;;  %5773 = vmatmul.mubr.msk.f32.vlgmr.msra.gmra.mrb[46].mxu1 %vm1597_vm4, %v4198_v21 }
 0xf24   : > { %5781 = vmatpush3.msra.mxu1 %v5103_v20  ;;  %5782 = vmatprep.mubr.msk.f32.mxu1 %vm6224_vm2, %v6225_v61  ;;  %v5134_v20 = vld [vmem:[%s7364_s14 + $0xe8] sm:$0xff]  ;;  %v5135_v14 = vld [vmem:[%s7364_s14 + $0xf0] sm:$0xff] }
 0xf25   : > { %6047 = vmatprep.subr.bf16.mxu1 %v6223_v3  ;;  %v6066_v21 = vpack.c.bf16 %v5134_v20, %v5133_v19 }
 0xf2a   : > { %v4350_v22 = vpop.f32.mrb[44].mxu1 }
 0xf2b   : > { %v5764_v23 = vpop.f32.mrb[45].mxu1  ;;  %5783 = vmatmul.mubr.msk.f32.vlgmr.msra.gmra.mrb[48].mxu1 %vm1597_vm4, %v4350_v22  ;;  %v5136_v22 = vld [vmem:[%s7364_s14 + $0xf8] sm:$0xff] }
 0xf2c   : > { %5828 = vmatprep.mubr.msk.f32.mxu1 %vm6224_vm2, %v6225_v61  ;;  %v5109_v61 = vld [vmem:[%s7359_s9 + $0x1] ss:$0 sm:$0xff]  ;;  %6049 = vmatpush3.bf16.msra.mxu1 %v6048_v56  ;;  %v6069_v23 = vpack.c.bf16 %v5136_v22, %v5135_v14 }
 0xf2d   : > { %6050 = vmatprep.subr.bf16.mxu1 %v6223_v3 }
 0xf30   : > { %6052 = vmatpush3.bf16.msra.mxu1 %v6051_v58 }
 0xf31   : > { %6053 = vmatprep.subr.bf16.mxu1 %v6223_v3 }
 0xf34   : > { %6055 = vmatpush3.bf16.msra.mxu1 %v6054_v62 }
 0xf35   : > { %6056 = vmatprep.subr.bf16.mxu1 %v6223_v3 }
 0xf38   : > { %6058 = vmatpush3.bf16.msra.mxu1 %v6057_v11 }
 0xf39   : > { %6059 = vmatprep.subr.bf16.mxu1 %v6223_v3 }
 0xf3c   : > { %6061 = vmatpush3.bf16.msra.mxu1 %v6060_v15 }
 0xf3d   : > { %6062 = vmatprep.subr.bf16.mxu1 %v6223_v3 }
 0xf40   : > { %6064 = vmatpush3.bf16.msra.mxu1 %v6063_v18 }
 0xf41   : > { %6065 = vmatprep.subr.bf16.mxu1 %v6223_v3 }
 0xf44   : > { %6067 = vmatpush3.bf16.msra.mxu1 %v6066_v21 }
 0xf45   : > { %6068 = vmatprep.subr.bf16.mxu1 %v6223_v3 }
 0xf48   : > { %6070 = vmatpush3.bf16.msra.mxu1 %v6069_v23 }
 0xfd6   : > { %v4428_v24 = vpop.f32.mrb[48].mxu0 }
 0xfd7   : > { %v5769_v25 = vpop.f32.mrb[49].mxu0  ;;  %v4651_v29 = vsel %vm676_vm1, %v4428_v24, 0.0  ;;  %v5119_v24 = vld [vmem:[%s7363_s13 + $0x1] ss:$0 sm:$0xff] }
 0xfe3   : > { %v4574_v26 = vpop.f32.mrb[50].mxu0 }
 0xfe4   : > { %v5779_v27 = vpop.f32.mrb[51].mxu0  ;;  %v4654_v33 = vsel %vm676_vm1, %v4574_v26, 0.0 }
 0xff6   : > { %v4501_v28 = vpop.f32.mrb[46].mxu1 }
 0xff7   : > { %v4652_v30 = vsel %vm676_vm1, %v4501_v28, 0.0  ;;  %v5774_v31 = vpop.f32.mrb[47].mxu1 }
 0xff8   : > { %v4653_v32 = vadd.f32 %v4652_v30, %v4651_v29 }
 0xffa   : > { %v4655_v34 = vadd.f32 %v4654_v33, %v4653_v32  ;;  %v5138_v32 = vld [vmem:[%s7365_s15 + $0x1] ss:$0 sm:$0xff] }
 0xffe   : > { %v4647_v35 = vpop.f32.mrb[48].mxu1 }
 0xfff   : > { %v4656_v36 = vsel %vm676_vm1, %v4647_v35, 0.0  ;;  %v5784_v37 = vpop.f32.mrb[49].mxu1 }
0x1000   : > { %v4657_v38 = vadd.f32 %v4656_v36, %v4655_v34 }
0x1002   : > { %v4666_v39 = vadd.f32 %v5109_v61, %v4657_v38 }
0x1004   : > { %v7206_v42 = vadd.f32 %v4666_v39, %v6886_v40  ;;  %v5115_v40 = vld [vmem:[%s7362_s12 + $0x28] sm:$0xff] }
0x1005   : > { %v6042_v50 = vpack.c.bf16 %v5115_v40, %v5114_v44  ;;  %v4887_v40 = vld [vmem:[%s7367_s17] sm:$0x1] }
0x1006   : > { %v4672_v43 = vsel %vm676_vm1, %v7206_v42, 0.0 }
0x1007   : > { %4673 = vadd.xlane.f32.xlu0 %v4672_v43  ;;  %6043 = vmatpush3.bf16.msra.mxu0 %v6042_v50 }
0x1008   : > { %6044 = vmatprep.subr.bf16.mxu0 %v6223_v3 }
0x100b   : > { %6046 = vmatpush3.bf16.msra.mxu0 %v6045_v52 }
0x1094   : > { %v4674_v45 = vpop.xlane.xlu0 %4673 }
0x1095   : > { %v4675_v46 = vmul.f32 0.03125, %v4674_v45 }
0x1097   : > { %v4676_v47 = vsub.f32 %v7206_v42, %v4675_v46 }
0x1099   : > { %v4677_v48 = vmul.f32 %v4676_v47, %v4676_v47 }
0x109b   : > { %v4678_v49 = vsel %vm676_vm1, %v4677_v48, 0.0 }
0x109c   : > { %4679 = vadd.xlane.f32.xlu1 %v4678_v49 }
0x1129   : > { %v4680_v63 = vpop.xlane.xlu1 %4679 }
0x112a   : > { %v4681_v0 = vmul.f32 0.03125, %v4680_v63 }
0x112c   : > { %v4682_v1 = vadd.f32 1e-05, %v4681_v0 }
0x112e   : > { %6153 = vrsqrt.f32 %v4682_v1 }
0x1138   : > { %v6154_v2 = vpop.eup %6153 }
0x1139   : > { %v4684_v5 = vmul.f32 %v6154_v2, %v4676_v47 }
0x113b   : > { %v4691_v7 = vmul.f32 %v5112_v4, %v4684_v5 }
0x113d   : > { %v4698_v8 = vadd.f32 %v5113_v6, %v4691_v7 }
0x113f   : > { %5794 = vmatmul.mubr.msk.f32.vlgmr.msra.gmra.mrb[52].mxu0 %vm721_vm3, %v4698_v8 }
0x1212   : > { %v4781_v25 = vpop.f32.mrb[52].mxu0 }
0x1213   : > { %v4782_v26 = vadd.f32 %v5119_v24, %v4781_v25  ;;  %v5795_v27 = vpop.f32.mrb[53].mxu0 }
0x1215   : > { %v4786_v28 = vmul.f32 0.70710677, %v4782_v26  ;;  %v4785_v29 = vmul.f32 0.5, %v4782_v26 }
0x1217   : > { %6155 = verf.f32 %v4786_v28 }
0x1221   : > { %v6156_v3 = vpop.eup %6155 }
0x1222   : > { %v4788_v30 = vadd.f32 1.0, %v6156_v3 }
0x1224   : > { %v4789_v31 = vmul.f32 %v4788_v30, %v4785_v29 }
0x1226   : > { %5829 = vmatmul.mubr.f32.vlgmr.msra.gmra.mrb[50].mxu1 %v4789_v31 }
0x12f9   : > { %v4881_v33 = vpop.f32.mrb[50].mxu1 }
0x12fa   : > { %v4882_v34 = vadd.f32 %v5138_v32, %v4881_v33  ;;  %v5830_v35 = vpop.f32.mrb[51].mxu1 }
0x12fc   : > { %v4885_v36 = vadd.f32 %v4882_v34, %v7206_v42  ;;  %v4886_v42 = vld [vmem:[%s7366_s16] sm:$0x1] }
0x12fe   : > { %v4889_v61 = vsel %vm4888_vm8, %v4885_v36, 0.0 }
0x12ff   : > { %4890 = vadd.xlane.f32.xlu0 %v4889_v61 }
0x138c   : > { %v4891_v37 = vpop.xlane.xlu0 %4890 }
0x138d   : > { %v4892_v38 = vmul.f32 0.03125, %v4891_v37 }
0x138f   : > { %v4893_v39 = vsub.f32 %v4885_v36, %v4892_v38 }
0x1391   : > { %v4894_v43 = vmul.f32 %v4893_v39, %v4893_v39 }
0x1393   : > { %v4895_v45 = vsel %vm4888_vm8, %v4894_v43, 0.0 }
0x1394   : > { %4896 = vadd.xlane.f32.xlu1 %v4895_v45 }
0x1421   : > { %v4897_v46 = vpop.xlane.xlu1 %4896 }
0x1422   : > { %v4898_v47 = vmul.f32 0.03125, %v4897_v46 }
0x1424   : > { %v4899_v48 = vadd.f32 1e-05, %v4898_v47 }
0x1426   : > { %6157 = vrsqrt.f32 %v4899_v48 }
0x1430   : > { %v6158_v49 = vpop.eup %6157 }
0x1431   : > { %v4901_v44 = vmul.f32 %v6158_v49, %v4893_v39 }
0x1433   : > { %v4902_v50 = vmul.f32 %v4901_v44, %v4886_v42 }
0x1435   : > { %v4903_v51 = vadd.f32 %v4902_v50, %v4887_v40 }
0x1437   : > { %4904 = vst.msk [vmem:[%s567_s27] sm:$0x1] %vm4888_vm8, %v4903_v51 }
0x1438   : > { %6172 = shalt.err (!%p6169_p3)
}
0x1439   : > { %s6173_s30 = scalar_lea.hbm %s7307_s18, 16  ;;  %s6177_s1 = scalar_lea.hbm %s7392_s22, 32 }
0x143a   : > { %p6174_p4 = scmp.ne.s32.totalorder %s7307_s18, %s6173_s30  ;;  %p6178_p9 = scmp.lt.u32.totalorder %s7307_s18, %s7392_s22 }
0x143b   : > { %p6179_p10 = scmp.lt.u32.totalorder %s6177_s1, %s6173_s30  ;;  %p6181_p12 = scmp.lt.u32.totalorder %s6173_s30, %s7307_s18 }
0x143c   : > { %p6175_p7 = pnand %p6174_p4, %p6360_p5 }
0x143d   : > { %p6180_p11 = por %p6179_p10, %p6178_p9 }
0x143e   : > { %p6176_p8 = pneg %p6175_p7 }
0x143f   : > { %p6182_p13 = por %p6181_p12, %p6180_p11 }
0x1441   : > { %p6183_p0 = pnand %p6182_p13, %p6176_p8 }
0x1443   : > { %6186 = shalt.err (!%p6183_p0)
}
0x1444   : > { %6071 = dma.vmem_to_hbm [thread:$0]  (%p6360_p5), %s7309_s23, 16, %s7307_s18, %s4906_s20  }
0x1445 PF: > { %s7393_s21 = sld [smem:[#allocation7_spill]]  ;;  %s7394_s29 = sld [smem:[#allocation5_spill]] }
0x144b   : > { %p6077_p1 = scmp.ge.s32.totalorder %s7393_s21, 2  ;;  %s4930_s19 = sand.u32 1, %s7394_s29  }
0x144c   : > { %s4931_s27 = scalar_lea.sflag [#allocation3], %s4930_s19 }
0x144d   : > { %p6074_p2 = pnand %p6077_p1, %p6364_p6 }
0x144f   : > { %6204 = dma.done.wait (!%p6074_p2), %s4931_s27, 16  }
0x1450   : > { %6206 = vsyncadd (!%p6074_p2), %s4931_s27, 4294967280  ;;  %s7396_s30 = sld [smem:[#allocation8_spill]]  ;;  %s7397_s1 = sld [smem:[#allocation6_spill]] }
0x1451   : > { %s7398_s29 = sld [smem:[#allocation9_spill]]  ;;  %s7399_s27 = smov %s6213_s28 }
0x1456   : > { %p28_p3 = scmp.ge.s32.totalorder %s7396_s30, 4   ;;  %s7400_s28 = smov %s7397_s1 }
0x1458   :  { %30 = sbr.rel (!%p28_p3) target bundleno = 8 (0x8), region = 140 }
0x145f   :  { %4935 = vsyncpa [#allocation3], 1 }
0x1460   :  { %4937 = vsyncpa [#allocation3 + $0x1], 1 }

</bundles_post_ra>
